<compile_context>
chip_gen: v5e
topology: v5e:2x2
jax: 0.10.0
libtpu: 0.0.40
codegen_flags: <defaults>
</compile_context>

<pallas_src>
import functools

import jax
import jax.numpy as jnp
from jax import lax
from jax.experimental import pallas as pl
from jax.experimental.pallas import tpu as pltpu

EPS = 1e-12
LANE = 128


def _round_up(x, m):
    return (x + m - 1) // m * m


def _choose_node_tile(n):
    # Node-row / contraction tile. Multiple of 128 (lane constraint for the A tile)
    # and of 8 (sublane constraint). Sized well under v7x's 64 MiB VMEM.
    if n >= 2048:
        return 512
    if n >= 256:
        return 256
    return 128


def _proj_normalize(y):
    # Projective normalization: per-row unit-norm representative.
    # rsqrt goes to the EUP slot; the scale multiply stays on the VPU.
    ss = jnp.sum(y * y, axis=-1, keepdims=True)
    return y * lax.rsqrt(ss + EPS)


# --------------------------------------------------------------------------- #
# Pallas kernels
# --------------------------------------------------------------------------- #
def hyp_linear_kernel(x_ref, w_ref, b_ref, o_ref, *, apply_relu):
    """One row-tile of: y = proj_normalize(x @ W + b), optional ReLU."""
    y = jnp.dot(x_ref[...], w_ref[...], preferred_element_type=jnp.float32)
    y = _proj_normalize(y + b_ref[...])
    if apply_relu:
        y = jnp.maximum(y, 0.0)
    o_ref[...] = y.astype(o_ref.dtype)


def mp_linear_kernel(a_ref, x_ref, wm_ref, bm_ref, wl_ref, bl_ref, o_ref, acc_ref,
                     *, apply_relu):
    """Fused per-layer chain (one row-tile, k-tiled contraction over nodes):
         agg = A_norm @ x                       (f32 VMEM accumulator across k)
         h   = proj_normalize(agg @ Wm + bm)    (message-passing transform)
         out = relu(proj_normalize(h @ Wl + bl))(this layer's HyperbolicLinear)
       Bias / normalize / ReLU / cast are hoisted into the last-k epilogue only."""
    k = pl.program_id(1)

    @pl.when(k == 0)
    def _():
        acc_ref[...] = jnp.zeros_like(acc_ref)

    acc_ref[...] += jnp.dot(a_ref[...], x_ref[...],
                            preferred_element_type=jnp.float32)

    @pl.when(k == pl.num_programs(1) - 1)
    def _():
        agg = acc_ref[...]
        h = jnp.dot(agg.astype(wm_ref.dtype), wm_ref[...],
                    preferred_element_type=jnp.float32)
        h = _proj_normalize(h + bm_ref[...])
        z = jnp.dot(h.astype(wl_ref.dtype), wl_ref[...],
                    preferred_element_type=jnp.float32)
        z = _proj_normalize(z + bl_ref[...])
        if apply_relu:
            z = jnp.maximum(z, 0.0)
        o_ref[...] = z.astype(o_ref.dtype)


# --------------------------------------------------------------------------- #
# Wrappers (operate on already-padded, lane-dense arrays)
# --------------------------------------------------------------------------- #
def hyperbolic_linear(x, w, b, *, apply_relu, out_dtype, tm):
    n_pad, fin_pad = x.shape
    fout_pad = w.shape[1]
    kernel = functools.partial(hyp_linear_kernel, apply_relu=apply_relu)
    return pl.pallas_call(
        kernel,
        out_shape=jax.ShapeDtypeStruct((n_pad, fout_pad), out_dtype),
        grid=(n_pad // tm,),
        in_specs=[
            pl.BlockSpec((tm, fin_pad), lambda i: (i, 0)),
            pl.BlockSpec((fin_pad, fout_pad), lambda i: (0, 0)),
            pl.BlockSpec((1, fout_pad), lambda i: (0, 0)),
        ],
        out_specs=pl.BlockSpec((tm, fout_pad), lambda i: (i, 0)),
        compiler_params=pltpu.CompilerParams(
            dimension_semantics=("parallel",),
            vmem_limit_bytes=32 * 1024 * 1024,
        ),
    )(x, w, b)


def hyperbolic_mp_linear(a_norm, x, wm, bm, wl, bl, *, apply_relu, out_dtype, tm, tk):
    n_pad, fh_pad = x.shape
    fout_pad = wl.shape[1]
    kernel = functools.partial(mp_linear_kernel, apply_relu=apply_relu)
    return pl.pallas_call(
        kernel,
        out_shape=jax.ShapeDtypeStruct((n_pad, fout_pad), out_dtype),
        grid=(n_pad // tm, n_pad // tk),
        in_specs=[
            pl.BlockSpec((tm, tk), lambda i, k: (i, k)),          # A_norm tile
            pl.BlockSpec((tk, fh_pad), lambda i, k: (k, 0)),      # x tile
            pl.BlockSpec((fh_pad, fh_pad), lambda i, k: (0, 0)),  # Wm (resident)
            pl.BlockSpec((1, fh_pad), lambda i, k: (0, 0)),       # bm
            pl.BlockSpec((fh_pad, fout_pad), lambda i, k: (0, 0)),# Wl (resident)
            pl.BlockSpec((1, fout_pad), lambda i, k: (0, 0)),     # bl
        ],
        out_specs=pl.BlockSpec((tm, fout_pad), lambda i, k: (i, 0)),
        scratch_shapes=[pltpu.VMEM((tm, fh_pad), jnp.float32)],
        compiler_params=pltpu.CompilerParams(
            dimension_semantics=("parallel", "arbitrary"),
            vmem_limit_bytes=32 * 1024 * 1024,
        ),
    )(a_norm, x, wm, bm, wl, bl)


# --------------------------------------------------------------------------- #
# Parameter init (deterministic, synthetic)
# --------------------------------------------------------------------------- #
def init_params(key, in_c, hidden_c, out_c, num_layers):
    dims = [in_c] + [hidden_c] * (num_layers - 1) + [out_c]
    params = {"layers": [], "mp": []}
    for li in range(num_layers):
        key, kw, kb = jax.random.split(key, 3)
        fin, fout = dims[li], dims[li + 1]
        scale = 1.0 / float(fin) ** 0.5
        w = jax.random.uniform(kw, (fin, fout), jnp.float32, -scale, scale)
        b = jax.random.uniform(kb, (1, fout), jnp.float32, -scale, scale)
        params["layers"].append((w, b))
    for _ in range(num_layers):
        key, kw, kb = jax.random.split(key, 3)
        scale = 1.0 / float(hidden_c) ** 0.5
        w = jax.random.uniform(kw, (hidden_c, hidden_c), jnp.float32, -scale, scale)
        b = jax.random.uniform(kb, (1, hidden_c), jnp.float32, -scale, scale)
        params["mp"].append((w, b))
    return params


def _pad_2d(a, rows, cols, dtype):
    return jnp.pad(a, ((0, rows - a.shape[0]), (0, cols - a.shape[1]))).astype(dtype)


# --------------------------------------------------------------------------- #
# HGCN forward (mirrors the PyTorch HGCN.forward control flow, inference mode)
# --------------------------------------------------------------------------- #
def hgcn_forward(params, x, edge_index, num_layers=2, dropout=0.0):
    N, fin = x.shape
    hidden = params["mp"][0][0].shape[0]
    out_c = params["layers"][-1][0].shape[1]

    tile = _choose_node_tile(N)
    n_pad = _round_up(N, tile)
    fin_pad = _round_up(fin, LANE)
    fh_pad = _round_up(hidden, LANE)
    fo_pad = _round_up(out_c, LANE)

    compute_dtype = jnp.bfloat16  # MXU inputs; accumulation stays f32 inside kernels

    src, dst = edge_index[0], edge_index[1]
    # Dense row-normalized adjacency for mean aggregation: out[i] = mean_{j->i} x[j].
    # Padded rows/cols are all-zero, so padded nodes never leak into real rows.
    # TODO(synk): for large sparse graphs replace the dense N_pad x N_pad adjacency with
    # CSR neighbor lists prefetched via pltpu.PrefetchScalarGridSpec (O(E*F) instead of O(N^2*F)).
    a = jnp.zeros((n_pad, n_pad), jnp.float32).at[dst, src].add(1.0)
    deg = jnp.sum(a, axis=1, keepdims=True)
    a_norm = jnp.where(deg > 0, a / jnp.maximum(deg, 1.0), 0.0).astype(compute_dtype)

    # TODO(synk): compute_cross_ratio / restore_cross_ratio sources are not provided
    # by the reference module; the cross-ratio restoration branch is omitted.

    x_p = jnp.pad(x, ((0, n_pad - N), (0, fin_pad - fin))).astype(compute_dtype)

    # ----- layer 0: HyperbolicLinear (no activation) -----
    w0, b0 = params["layers"][0]
    w0_p = _pad_2d(w0, fin_pad, fh_pad, compute_dtype)
    b0_p = _pad_2d(b0, 1, fh_pad, jnp.float32)
    h = hyperbolic_linear(x_p, w0_p, b0_p, apply_relu=False,
                          out_dtype=compute_dtype, tm=tile)

    # Reference quirk preserved: message_passing_layers[0] is used for every layer.
    wm, bm = params["mp"][0]
    wm_p = _pad_2d(wm, fh_pad, fh_pad, compute_dtype)
    bm_p = _pad_2d(bm, 1, fh_pad, jnp.float32)

    # ----- layers 1..num_layers-1: fused (mean-aggr MP + HyperbolicLinear + ReLU) -----
    for i in range(1, num_layers):
        # dropout == 0.0 -> no-op (eval semantics of F.dropout)
        wi, bi = params["layers"][i]
        is_last = i == num_layers - 1
        fo_i = fo_pad if is_last else fh_pad
        wi_p = _pad_2d(wi, fh_pad, fo_i, compute_dtype)
        bi_p = _pad_2d(bi, 1, fo_i, jnp.float32)
        out_dtype = jnp.float32 if is_last else compute_dtype
        h = hyperbolic_mp_linear(a_norm, h, wm_p, bm_p, wi_p, bi_p,
                                 apply_relu=True, out_dtype=out_dtype,
                                 tm=tile, tk=tile)

    return h[:N, :out_c]


if __name__ == "__main__":
    key = jax.random.PRNGKey(0)
    k_x, k_e, k_p = jax.random.split(key, 3)

    N, E = 8, 24
    in_channels, hidden_channels, out_channels = 16, 32, 16
    num_layers = 2

    x = jax.random.normal(k_x, (N, in_channels), jnp.float32)
    edge_index = jax.random.randint(k_e, (2, E), 0, N, jnp.int32)
    params = init_params(k_p, in_channels, hidden_channels, out_channels, num_layers)

    fwd = jax.jit(functools.partial(hgcn_forward, num_layers=num_layers))
    out = jax.block_until_ready(fwd(params, x, edge_index))

    assert out.shape == (N, out_channels), out.shape
    assert bool(jnp.all(jnp.isfinite(out)))
    print("KERNEL_OK")
</pallas_src>

<mosaic_0001>
module attributes {stable_mosaic.version = 11 : i64} {
  func.func @hyp_linear_kernel(%arg0: i32, %arg1: memref<128x128xbf16, #tpu.memory_space<vmem>>, %arg2: memref<128x128xbf16, #tpu.memory_space<vmem>>, %arg3: memref<1x128xf32, #tpu.memory_space<vmem>>, %arg4: memref<128x128xbf16, #tpu.memory_space<vmem>>) attributes {dimension_semantics = [#tpu.dimension_semantics<parallel>], iteration_bounds = array<i64: 1>, scalar_prefetch = 0 : i64, scratch_operands = 0 : i64, tpu.core_type = #tpu.core_type<tc>, window_params = [{transform_indices = @transform_0, window_bounds = array<i64: 128, 128>}, {pipeline_mode = #tpu.pipeline_mode<synchronous>, transform_indices = @transform_1, window_bounds = array<i64: 128, 128>}, {pipeline_mode = #tpu.pipeline_mode<synchronous>, transform_indices = @transform_2, window_bounds = array<i64: 1, 128>}, {transform_indices = @transform_3, window_bounds = array<i64: 128, 128>}]} {
    %c0 = arith.constant 0 : index
    %c0_0 = arith.constant 0 : index
    %0 = vector.load %arg1[%c0, %c0_0] : memref<128x128xbf16, #tpu.memory_space<vmem>>, vector<128x128xbf16>
    %c0_1 = arith.constant 0 : index
    %c0_2 = arith.constant 0 : index
    %1 = vector.load %arg2[%c0_1, %c0_2] : memref<128x128xbf16, #tpu.memory_space<vmem>>, vector<128x128xbf16>
    %cst = arith.constant dense<0.000000e+00> : vector<128x128xf32>
    %2 = tpu.matmul %0, %1, %cst {dimension_numbers = #tpu.dot_dimension_numbers<[1], [0], [0], [1], [0, 0, 1, 1], [], []>} : vector<128x128xbf16>, vector<128x128xbf16>, vector<128x128xf32> -> vector<128x128xf32>
    %c0_3 = arith.constant 0 : index
    %c0_4 = arith.constant 0 : index
    %3 = vector.load %arg3[%c0_3, %c0_4] : memref<1x128xf32, #tpu.memory_space<vmem>>, vector<1x128xf32>
    %4 = vector.broadcast %3 : vector<1x128xf32> to vector<128x128xf32>
    %5 = arith.addf %2, %4 : vector<128x128xf32>
    %6 = arith.mulf %5, %5 : vector<128x128xf32>
    %cst_5 = arith.constant dense<0.000000e+00> : vector<128xf32>
    %7 = vector.multi_reduction <add>, %6, %cst_5 [1] : vector<128x128xf32> to vector<128xf32>
    %8 = vector.shape_cast %7 : vector<128xf32> to vector<128x1xf32>
    %cst_6 = arith.constant 9.99999996E-13 : f32
    %9 = vector.broadcast %cst_6 : f32 to vector<128x1xf32>
    %10 = arith.addf %8, %9 : vector<128x1xf32>
    %11 = math.rsqrt %10 : vector<128x1xf32>
    %12 = vector.broadcast %11 : vector<128x1xf32> to vector<128x128xf32>
    %13 = arith.mulf %5, %12 : vector<128x128xf32>
    %14 = arith.truncf %13 : vector<128x128xf32> to vector<128x128xbf16>
    %c0_7 = arith.constant 0 : index
    %c0_8 = arith.constant 0 : index
    %15 = vector.load %arg4[%c0_7, %c0_8] : memref<128x128xbf16, #tpu.memory_space<vmem>>, vector<128x128xbf16>
    tpu.vector_store %arg4[%c0_7, %c0_8], %14 {strides = array<i32>} : memref<128x128xbf16, #tpu.memory_space<vmem>>, vector<128x128xbf16>,
    return
  }
  func.func @transform_0(%arg0: i32) -> (i32, i32) {
    %c0_i32 = arith.constant 0 : i32
    %c0_i32_0 = arith.constant 0 : i32
    return %arg0, %c0_i32 : i32, i32
  }
  func.func @transform_1(%arg0: i32) -> (i32, i32) {
    %c0_i32 = arith.constant 0 : i32
    %c0_i32_0 = arith.constant 0 : i32
    %c0_i32_1 = arith.constant 0 : i32
    return %c0_i32, %c0_i32_0 : i32, i32
  }
  func.func @transform_2(%arg0: i32) -> (i32, i32) {
    %c0_i32 = arith.constant 0 : i32
    %c0_i32_0 = arith.constant 0 : i32
    %c0_i32_1 = arith.constant 0 : i32
    return %c0_i32, %c0_i32_0 : i32, i32
  }
  func.func @transform_3(%arg0: i32) -> (i32, i32) {
    %c0_i32 = arith.constant 0 : i32
    %c0_i32_0 = arith.constant 0 : i32
    return %arg0, %c0_i32 : i32, i32
  }
}

module attributes {stable_mosaic.version = 11 : i64} {
  func.func @mp_linear_kernel(%arg0: i32, %arg1: i32, %arg2: memref<128x128xbf16, #tpu.memory_space<vmem>>, %arg3: memref<128x128xbf16, #tpu.memory_space<vmem>>, %arg4: memref<128x128xbf16, #tpu.memory_space<vmem>>, %arg5: memref<1x128xf32, #tpu.memory_space<vmem>>, %arg6: memref<128x128xbf16, #tpu.memory_space<vmem>>, %arg7: memref<1x128xf32, #tpu.memory_space<vmem>>, %arg8: memref<128x128xf32, #tpu.memory_space<vmem>>, %arg9: memref<128x128xf32, #tpu.memory_space<vmem>>) attributes {dimension_semantics = [#tpu.dimension_semantics<parallel>, #tpu.dimension_semantics<arbitrary>], iteration_bounds = array<i64: 1, 1>, scalar_prefetch = 0 : i64, scratch_operands = 1 : i64, tpu.core_type = #tpu.core_type<tc>, window_params = [{transform_indices = @transform_0, window_bounds = array<i64: 128, 128>}, {transform_indices = @transform_1, window_bounds = array<i64: 128, 128>}, {pipeline_mode = #tpu.pipeline_mode<synchronous>, transform_indices = @transform_2, window_bounds = array<i64: 128, 128>}, {pipeline_mode = #tpu.pipeline_mode<synchronous>, transform_indices = @transform_3, window_bounds = array<i64: 1, 128>}, {pipeline_mode = #tpu.pipeline_mode<synchronous>, transform_indices = @transform_4, window_bounds = array<i64: 128, 128>}, {pipeline_mode = #tpu.pipeline_mode<synchronous>, transform_indices = @transform_5, window_bounds = array<i64: 1, 128>}, {transform_indices = @transform_6, window_bounds = array<i64: 128, 128>}]} {
    %c0_i32 = arith.constant 0 : i32
    %0 = arith.cmpi eq, %arg1, %c0_i32 : i32
    %1 = arith.extui %0 : i1 to i32
    %c0_i32_0 = arith.constant 0 : i32
    %2 = arith.cmpi ne, %1, %c0_i32_0 : i32
    scf.if %2 {
      %cst_10 = arith.constant 0.000000e+00 : f32
      %12 = vector.broadcast %cst_10 : f32 to vector<128x128xf32>
      %c0_11 = arith.constant 0 : index
      %c0_12 = arith.constant 0 : index
      %13 = vector.load %arg9[%c0_11, %c0_12] : memref<128x128xf32, #tpu.memory_space<vmem>>, vector<128x128xf32>
      tpu.vector_store %arg9[%c0_11, %c0_12], %12 {strides = array<i32>} : memref<128x128xf32, #tpu.memory_space<vmem>>, vector<128x128xf32>,
    } else {
    }
    %c0 = arith.constant 0 : index
    %c0_1 = arith.constant 0 : index
    %3 = vector.load %arg9[%c0, %c0_1] : memref<128x128xf32, #tpu.memory_space<vmem>>, vector<128x128xf32>
    %c0_2 = arith.constant 0 : index
    %c0_3 = arith.constant 0 : index
    %4 = vector.load %arg2[%c0_2, %c0_3] : memref<128x128xbf16, #tpu.memory_space<vmem>>, vector<128x128xbf16>
    %c0_4 = arith.constant 0 : index
    %c0_5 = arith.constant 0 : index
    %5 = vector.load %arg3[%c0_4, %c0_5] : memref<128x128xbf16, #tpu.memory_space<vmem>>, vector<128x128xbf16>
    %cst = arith.constant dense<0.000000e+00> : vector<128x128xf32>
    %6 = tpu.matmul %4, %5, %cst {dimension_numbers = #tpu.dot_dimension_numbers<[1], [0], [0], [1], [0, 0, 1, 1], [], []>} : vector<128x128xbf16>, vector<128x128xbf16>, vector<128x128xf32> -> vector<128x128xf32>
    %7 = arith.addf %3, %6 : vector<128x128xf32>
    %c0_6 = arith.constant 0 : index
    %c0_7 = arith.constant 0 : index
    %8 = vector.load %arg9[%c0_6, %c0_7] : memref<128x128xf32, #tpu.memory_space<vmem>>, vector<128x128xf32>
    tpu.vector_store %arg9[%c0_6, %c0_7], %7 {strides = array<i32>} : memref<128x128xf32, #tpu.memory_space<vmem>>, vector<128x128xf32>,
    %c0_i32_8 = arith.constant 0 : i32
    %9 = arith.cmpi eq, %arg1, %c0_i32_8 : i32
    %10 = arith.extui %9 : i1 to i32
    %c0_i32_9 = arith.constant 0 : i32
    %11 = arith.cmpi ne, %10, %c0_i32_9 : i32
    scf.if %11 {
      %c0_10 = arith.constant 0 : index
      %c0_11 = arith.constant 0 : index
      %12 = vector.load %arg9[%c0_10, %c0_11] : memref<128x128xf32, #tpu.memory_space<vmem>>, vector<128x128xf32>
      %13 = arith.truncf %12 : vector<128x128xf32> to vector<128x128xbf16>
      %c0_12 = arith.constant 0 : index
      %c0_13 = arith.constant 0 : index
      %14 = vector.load %arg4[%c0_12, %c0_13] : memref<128x128xbf16, #tpu.memory_space<vmem>>, vector<128x128xbf16>
      %cst_14 = arith.constant dense<0.000000e+00> : vector<128x128xf32>
      %15 = tpu.matmul %13, %14, %cst_14 {dimension_numbers = #tpu.dot_dimension_numbers<[1], [0], [0], [1], [0, 0, 1, 1], [], []>} : vector<128x128xbf16>, vector<128x128xbf16>, vector<128x128xf32> -> vector<128x128xf32>
      %c0_15 = arith.constant 0 : index
      %c0_16 = arith.constant 0 : index
      %16 = vector.load %arg5[%c0_15, %c0_16] : memref<1x128xf32, #tpu.memory_space<vmem>>, vector<1x128xf32>
      %17 = vector.broadcast %16 : vector<1x128xf32> to vector<128x128xf32>
      %18 = arith.addf %15, %17 : vector<128x128xf32>
      %19 = arith.mulf %18, %18 : vector<128x128xf32>
      %cst_17 = arith.constant dense<0.000000e+00> : vector<128xf32>
      %20 = vector.multi_reduction <add>, %19, %cst_17 [1] : vector<128x128xf32> to vector<128xf32>
      %21 = vector.shape_cast %20 : vector<128xf32> to vector<128x1xf32>
      %cst_18 = arith.constant 9.99999996E-13 : f32
      %22 = vector.broadcast %cst_18 : f32 to vector<128x1xf32>
      %23 = arith.addf %21, %22 : vector<128x1xf32>
      %24 = math.rsqrt %23 : vector<128x1xf32>
      %25 = vector.broadcast %24 : vector<128x1xf32> to vector<128x128xf32>
      %26 = arith.mulf %18, %25 : vector<128x128xf32>
      %27 = arith.truncf %26 : vector<128x128xf32> to vector<128x128xbf16>
      %c0_19 = arith.constant 0 : index
      %c0_20 = arith.constant 0 : index
      %28 = vector.load %arg6[%c0_19, %c0_20] : memref<128x128xbf16, #tpu.memory_space<vmem>>, vector<128x128xbf16>
      %cst_21 = arith.constant dense<0.000000e+00> : vector<128x128xf32>
      %29 = tpu.matmul %27, %28, %cst_21 {dimension_numbers = #tpu.dot_dimension_numbers<[1], [0], [0], [1], [0, 0, 1, 1], [], []>} : vector<128x128xbf16>, vector<128x128xbf16>, vector<128x128xf32> -> vector<128x128xf32>
      %c0_22 = arith.constant 0 : index
      %c0_23 = arith.constant 0 : index
      %30 = vector.load %arg7[%c0_22, %c0_23] : memref<1x128xf32, #tpu.memory_space<vmem>>, vector<1x128xf32>
      %31 = vector.broadcast %30 : vector<1x128xf32> to vector<128x128xf32>
      %32 = arith.addf %29, %31 : vector<128x128xf32>
      %33 = arith.mulf %32, %32 : vector<128x128xf32>
      %cst_24 = arith.constant dense<0.000000e+00> : vector<128xf32>
      %34 = vector.multi_reduction <add>, %33, %cst_24 [1] : vector<128x128xf32> to vector<128xf32>
      %35 = vector.shape_cast %34 : vector<128xf32> to vector<128x1xf32>
      %cst_25 = arith.constant 9.99999996E-13 : f32
      %36 = vector.broadcast %cst_25 : f32 to vector<128x1xf32>
      %37 = arith.addf %35, %36 : vector<128x1xf32>
      %38 = math.rsqrt %37 : vector<128x1xf32>
      %39 = vector.broadcast %38 : vector<128x1xf32> to vector<128x128xf32>
      %40 = arith.mulf %32, %39 : vector<128x128xf32>
      %cst_26 = arith.constant 0.000000e+00 : f32
      %41 = vector.broadcast %cst_26 : f32 to vector<128x128xf32>
      %42 = arith.maximumf %40, %41 : vector<128x128xf32>
      %c0_27 = arith.constant 0 : index
      %c0_28 = arith.constant 0 : index
      %43 = vector.load %arg8[%c0_27, %c0_28] : memref<128x128xf32, #tpu.memory_space<vmem>>, vector<128x128xf32>
      tpu.vector_store %arg8[%c0_27, %c0_28], %42 {strides = array<i32>} : memref<128x128xf32, #tpu.memory_space<vmem>>, vector<128x128xf32>,
    } else {
    }
    return
  }
  func.func @transform_0(%arg0: i32, %arg1: i32) -> (i32, i32) {
    %c0_i32 = arith.constant 0 : i32
    return %arg0, %arg1 : i32, i32
  }
  func.func @transform_1(%arg0: i32, %arg1: i32) -> (i32, i32) {
    %c0_i32 = arith.constant 0 : i32
    %c0_i32_0 = arith.constant 0 : i32
    return %arg1, %c0_i32 : i32, i32
  }
  func.func @transform_2(%arg0: i32, %arg1: i32) -> (i32, i32) {
    %c0_i32 = arith.constant 0 : i32
    %c0_i32_0 = arith.constant 0 : i32
    %c0_i32_1 = arith.constant 0 : i32
    return %c0_i32, %c0_i32_0 : i32, i32
  }
  func.func @transform_3(%arg0: i32, %arg1: i32) -> (i32, i32) {
    %c0_i32 = arith.constant 0 : i32
    %c0_i32_0 = arith.constant 0 : i32
    %c0_i32_1 = arith.constant 0 : i32
    return %c0_i32, %c0_i32_0 : i32, i32
  }
  func.func @transform_4(%arg0: i32, %arg1: i32) -> (i32, i32) {
    %c0_i32 = arith.constant 0 : i32
    %c0_i32_0 = arith.constant 0 : i32
    %c0_i32_1 = arith.constant 0 : i32
    return %c0_i32, %c0_i32_0 : i32, i32
  }
  func.func @transform_5(%arg0: i32, %arg1: i32) -> (i32, i32) {
    %c0_i32 = arith.constant 0 : i32
    %c0_i32_0 = arith.constant 0 : i32
    %c0_i32_1 = arith.constant 0 : i32
    return %c0_i32, %c0_i32_0 : i32, i32
  }
  func.func @transform_6(%arg0: i32, %arg1: i32) -> (i32, i32) {
    %c0_i32 = arith.constant 0 : i32
    %c0_i32_0 = arith.constant 0 : i32
    return %arg0, %c0_i32 : i32, i32
  }
}

</mosaic_0001>

<bundles_post_ra>
// kernel: hgcn_forward.2
= control target key start
LH: loop header
LB: loop body
LE: loop exit
PB: predicated region body
PF: predicated region fallthrough
CT: control target
= control target key end

     0   :  { %s1047_s1 = inlined_call_operand.vmem [shape: bf16[128,128], index: 1, kind: input, shape index: {}]   ;;  %s1048_s2 = inlined_call_operand.vmem [shape: f32[1,128], index: 2, kind: input, shape index: {}]   ;;  %s1049_s0 = inlined_call_operand.vmem [shape: bf16[128,128], index: 0, kind: input, shape index: {}]   ;;  %s1050_s3 = inlined_call_operand.vmem [shape: bf16[128,128], index: 3, kind: output, shape index: {}]  }
   0x1   :  { %v550_v0 = vld [vmem:[%s1047_s1 + $0x38] sm:$0xff]  ;;  %v549_v1 = vld [vmem:[%s1047_s1 + $0x30] sm:$0xff]  ;;  %v548_v2 = vld [vmem:[%s1047_s1 + $0x28] sm:$0xff] }
   0x2   :  { %146 = vmatpush.bf16.msra.mxu0 %v550_v0  ;;  %598 = vmatpush.bf16.msra.mxu1 %v550_v0  ;;  %v547_v3 = vld [vmem:[%s1047_s1 + $0x20] sm:$0xff]  ;;  %v546_v4 = vld [vmem:[%s1047_s1 + $0x18] sm:$0xff]  ;;  %v545_v5 = vld [vmem:[%s1047_s1 + $0x10] sm:$0xff] }
   0x3   :  { %599 = vmatpush.bf16.msra.mxu2 %v550_v0  ;;  %600 = vmatpush.bf16.msra.mxu3 %v550_v0  ;;  %v544_v6 = vld [vmem:[%s1047_s1 + $0x8] sm:$0xff]  ;;  %v543_v7 = vld [vmem:[%s1047_s1] sm:$0xff]  ;;  %v537_v9 = vld [vmem:[%s1049_s0 + $0x10] sm:$0xff] }
   0x4   :  { %v535_v8 = vld [vmem:[%s1049_s0] sm:$0xff]  ;;  %v541_v11 = vld [vmem:[%s1049_s0 + $0x30] sm:$0xff]  ;;  %v536_v12 = vld [vmem:[%s1049_s0 + $0x8] sm:$0xff] }
   0x5   :  { %v539_v10 = vld [vmem:[%s1049_s0 + $0x20] sm:$0xff]  ;;  %v538_v13 = vld [vmem:[%s1049_s0 + $0x18] sm:$0xff]  ;;  %v540_v14 = vld [vmem:[%s1049_s0 + $0x28] sm:$0xff] }
   0x6   :  { %147 = vmatpush.bf16.msra.mxu0 %v549_v1  ;;  %601 = vmatpush.bf16.msra.mxu1 %v549_v1  ;;  %v542_v15 = vld [vmem:[%s1049_s0 + $0x38] sm:$0xff]  ;;  %v622_v16 = vld [vmem:[%s1048_s2] ss:$0 sm:$0xff] }
   0x7   :  { %602 = vmatpush.bf16.msra.mxu2 %v549_v1  ;;  %603 = vmatpush.bf16.msra.mxu3 %v549_v1 }
   0xa   :  { %148 = vmatpush.bf16.msra.mxu0 %v548_v2  ;;  %604 = vmatpush.bf16.msra.mxu1 %v548_v2 }
   0xb   :  { %605 = vmatpush.bf16.msra.mxu2 %v548_v2  ;;  %606 = vmatpush.bf16.msra.mxu3 %v548_v2 }
   0xe   :  { %149 = vmatpush.bf16.msra.mxu0 %v547_v3  ;;  %607 = vmatpush.bf16.msra.mxu1 %v547_v3 }
   0xf   :  { %608 = vmatpush.bf16.msra.mxu2 %v547_v3  ;;  %609 = vmatpush.bf16.msra.mxu3 %v547_v3 }
  0x12   :  { %150 = vmatpush.bf16.msra.mxu0 %v546_v4  ;;  %610 = vmatpush.bf16.msra.mxu1 %v546_v4 }
  0x13   :  { %611 = vmatpush.bf16.msra.mxu2 %v546_v4  ;;  %612 = vmatpush.bf16.msra.mxu3 %v546_v4 }
  0x16   :  { %151 = vmatpush.bf16.msra.mxu0 %v545_v5  ;;  %613 = vmatpush.bf16.msra.mxu1 %v545_v5 }
  0x17   :  { %614 = vmatpush.bf16.msra.mxu2 %v545_v5  ;;  %615 = vmatpush.bf16.msra.mxu3 %v545_v5 }
  0x1a   :  { %152 = vmatpush.bf16.msra.mxu0 %v544_v6  ;;  %616 = vmatpush.bf16.msra.mxu1 %v544_v6 }
  0x1b   :  { %617 = vmatpush.bf16.msra.mxu2 %v544_v6  ;;  %618 = vmatpush.bf16.msra.mxu3 %v544_v6 }
  0x1e   :  { %153 = vmatpush.bf16.msra.mxu0 %v543_v7  ;;  %619 = vmatpush.bf16.msra.mxu1 %v543_v7 }
  0x1f   :  { %620 = vmatpush.bf16.msra.mxu2 %v543_v7  ;;  %621 = vmatpush.bf16.msra.mxu3 %v543_v7 }
  0x21   :  { %154 = vmatmul.bf16.vlgmr.msra.gmra.mxu0 %v535_v8  ;;  %164 = vmatmul.bf16.vlgmr.msra.gmra.mxu1 %v537_v9 }
  0x22   :  { %174 = vmatmul.bf16.vlgmr.msra.gmra.mxu2 %v539_v10  ;;  %184 = vmatmul.bf16.vlgmr.msra.gmra.mxu3 %v541_v11 }
  0x31   :  { %159 = vmatmul.bf16.gmra.mxu0 %v536_v12  ;;  %169 = vmatmul.bf16.gmra.mxu1 %v538_v13 }
  0x32   :  { %179 = vmatmul.bf16.gmra.mxu2 %v540_v14  ;;  %189 = vmatmul.bf16.gmra.mxu3 %v542_v15 }
  0x9e   :  { %v155_v17 = vpop.f32.mrf.mxu0  ;;  %v165_v18 = vpop.f32.mrf.mxu1 }
  0x9f   :  { %v726_v19 = vadd.f32 %v622_v16, %v155_v17  ;;  %v728_v20 = vadd.f32 %v622_v16, %v165_v18 }
  0xa1   :  { %v199_v21 = vmul.f32 %v728_v20, %v728_v20  ;;  %v195_v22 = vmul.f32 %v726_v19, %v726_v19 }
  0xa3   :  { %219 = vadd.xlane.f32.xlu2 %v199_v21  ;;  %211 = vadd.xlane.f32.xlu0 %v195_v22 }
  0xa5   :  { %v175_v23 = vpop.f32.mrf.mxu2  ;;  %v185_v24 = vpop.f32.mrf.mxu3 }
  0xa6   :  { %v734_v25 = vadd.f32 %v622_v16, %v175_v23  ;;  %v157_v26 = vpop.f32.mrf.mxu0  ;;  %v736_v27 = vadd.f32 %v622_v16, %v185_v24  ;;  %v167_v30 = vpop.f32.mrf.mxu1 }
  0xa7   :  { %v742_v31 = vadd.f32 %v622_v16, %v167_v30  ;;  %v744_v33 = vadd.f32 %v622_v16, %v157_v26 }
  0xa8   :  { %v203_v28 = vmul.f32 %v734_v25, %v734_v25  ;;  %v207_v29 = vmul.f32 %v736_v27, %v736_v27 }
  0xa9   :  { %v200_v37 = vmul.f32 %v742_v31, %v742_v31  ;;  %v196_v39 = vmul.f32 %v744_v33, %v744_v33 }
  0xab   :  { %227 = vadd.xlane.f32.xlu2 %v203_v28  ;;  %235 = vadd.xlane.f32.xlu0 %v207_v29 }
  0xad   :  { %v177_v32 = vpop.f32.mrf.mxu2  ;;  %v187_v36 = vpop.f32.mrf.mxu3 }
  0xae   :  { %v160_v34 = vpop.f32.mrf.mxu0  ;;  %v754_v41 = vadd.f32 %v622_v16, %v177_v32  ;;  %v170_v44 = vpop.f32.mrf.mxu1  ;;  %v786_v63 = vadd.f32 %v622_v16, %v187_v36 }
  0xaf   :  { %v746_v35 = vadd.f32 %v622_v16, %v160_v34  ;;  %v762_v48 = vadd.f32 %v622_v16, %v170_v44 }
  0xb0   :  { %v204_v47 = vmul.f32 %v754_v41, %v754_v41  ;;  %v208_v0 = vmul.f32 %v786_v63, %v786_v63 }
  0xb1   :  { %v197_v38 = vmul.f32 %v746_v35, %v746_v35  ;;  %v201_v53 = vmul.f32 %v762_v48, %v762_v48 }
  0xb3   :  { %221 = vadd.xlane.f32.xlu2 %v200_v37  ;;  %215 = vadd.xlane.f32.xlu1 %v197_v38 }
  0xb4   :  { %213 = vadd.xlane.f32.xlu0 %v196_v39 }
  0xb5   :  { %v180_v40 = vpop.f32.mrf.mxu2  ;;  %v190_v43 = vpop.f32.mrf.mxu3 }
  0xb6   :  { %v756_v42 = vadd.f32 %v622_v16, %v180_v40  ;;  %v162_v46 = vpop.f32.mrf.mxu0  ;;  %v172_v56 = vpop.f32.mrf.mxu1  ;;  %v774_v57 = vadd.f32 %v622_v16, %v190_v43 }
  0xb7   :  { %v764_v49 = vadd.f32 %v622_v16, %v162_v46  ;;  %v778_v59 = vadd.f32 %v622_v16, %v172_v56 }
  0xb8   :  { %v205_v45 = vmul.f32 %v756_v42, %v756_v42  ;;  %v209_v60 = vmul.f32 %v774_v57, %v774_v57 }
  0xb9   :  { %v198_v54 = vmul.f32 %v764_v49, %v764_v49  ;;  %v202_v62 = vmul.f32 %v778_v59, %v778_v59 }
  0xbb   :  { %231 = vadd.xlane.f32.xlu1 %v205_v45 }
  0xbc   :  { %229 = vadd.xlane.f32.xlu0 %v204_v47 }
  0xbd   :  { %v182_v50 = vpop.f32.mrf.mxu2  ;;  %v192_v55 = vpop.f32.mrf.mxu3 }
  0xbe   :  { %v766_v51 = vadd.f32 %v622_v16, %v182_v50  ;;  %v776_v58 = vadd.f32 %v622_v16, %v192_v55 }
  0xc0   :  { %v206_v52 = vmul.f32 %v766_v51, %v766_v51  ;;  %v210_v61 = vmul.f32 %v776_v58, %v776_v58 }
  0xc2   :  { %233 = vadd.xlane.f32.xlu2 %v206_v52 }
  0xc3   :  { %217 = vadd.xlane.f32.xlu1 %v198_v54 }
  0xc4   :  { %223 = vadd.xlane.f32.xlu0 %v201_v53 }
  0xca   :  { %239 = vadd.xlane.f32.xlu2 %v209_v60 }
  0xcb   :  { %225 = vadd.xlane.f32.xlu1 %v202_v62 }
  0xcc   :  { %241 = vadd.xlane.f32.xlu0 %v210_v61 }
  0xd3   :  { %237 = vadd.xlane.f32.xlu1 %v208_v0 }
 0x116   :  { %v220_v1 = vpop.xlane.xlu2 %219  ;;  %v212_v2 = vpop.xlane.xlu0 %211 }
 0x117   :  { %v247_v3 = vadd.f32 1e-12, %v220_v1  ;;  %v790_v4 = vadd.f32 1e-12, %v212_v2 }
 0x119   :  { %623 = vrsqrt.f32 %v247_v3  ;;  %vm305_vm0 = vweird.f32 %v247_v3  ;;  %vm265_vm3 = vweird.f32 %v790_v4 }
 0x11a   :  { %625 = vrsqrt.f32 %v790_v4 }
 0x11e   :  { %v228_v5 = vpop.xlane.xlu2 %227  ;;  %v236_v6 = vpop.xlane.xlu0 %235 }
 0x11f   :  { %v624_v7 = vpop.eup %623  ;;  %v793_v8 = vadd.f32 1e-12, %v228_v5  ;;  %v800_v13 = vadd.f32 1e-12, %v236_v6 }
 0x120   :  { %v300_v9 = vmul.f32 %v624_v7, %v247_v3  ;;  %v796_v10 = vpop.eup %625  ;;  %vm306_vm1 = vweird.f32 %v624_v7 }
 0x121   :  { %627 = vrsqrt.f32 %v793_v8  ;;  %v260_v12 = vmul.f32 %v796_v10, %v790_v4  ;;  %vm827_vm2 = vmor %vm305_vm0, %vm306_vm1  ;;  %vm266_vm4 = vweird.f32 %v796_v10  ;;  %vm345_vm5 = vweird.f32 %v793_v8 }
 0x122   :  { %v301_v11 = vmul.f32 %v624_v7, %v300_v9  ;;  %vm861_vm9 = vmor %vm265_vm3, %vm266_vm4 }
 0x123   :  { %v261_v24 = vmul.f32 %v796_v10, %v260_v12 }
 0x124   :  { %v302_v22 = vmul.f32 0.5, %v301_v11 }
 0x125   :  { %v262_v29 = vmul.f32 0.5, %v261_v24 }
 0x126   :  { %v222_v14 = vpop.xlane.xlu2 %221  ;;  %v216_v15 = vpop.xlane.xlu1 %215  ;;  %v303_v28 = vsub.f32 1.5, %v302_v22 }
 0x127   :  { %v802_v16 = vpop.eup %627  ;;  %v804_v17 = vadd.f32 1e-12, %v222_v14  ;;  %v806_v18 = vadd.f32 1e-12, %v216_v15  ;;  %v214_v21 = vpop.xlane.xlu0 %213  ;;  %v263_v46 = vsub.f32 1.5, %v262_v29 }
 0x128   :  { %v808_v23 = vadd.f32 1e-12, %v214_v21  ;;  %v340_v26 = vmul.f32 %v802_v16, %v793_v8  ;;  %v304_v39 = vmul.f32 %v624_v7, %v303_v28  ;;  %vm346_vm6 = vweird.f32 %v802_v16 }
 0x129   :  { %629 = vrsqrt.f32 %v804_v17  ;;  %v264_v60 = vmul.f32 %v796_v10, %v263_v46  ;;  %vm315_vm8 = vweird.f32 %v804_v17  ;;  %vm888_vm14 = vmor %vm345_vm5, %vm346_vm6  ;;  %vm285_vm0 = vweird.f32 %v806_v18 }
 0x12a   :  { %631 = vrsqrt.f32 %v800_v13  ;;  %v341_v30 = vmul.f32 %v802_v16, %v340_v26  ;;  %v308_v54 = vsel %vm827_vm2, %v624_v7, %v304_v39  ;;  %vm275_vm12 = vweird.f32 %v808_v23 }
 0x12b   :  { %633 = vrsqrt.f32 %v806_v18  ;;  %v423_v7 = vmul.f32 %v308_v54, %v728_v20 }
 0x12c   :  { %635 = vrsqrt.f32 %v808_v23  ;;  %v342_v50 = vmul.f32 0.5, %v341_v30 }
 0x12e   :  { %v232_v32 = vpop.xlane.xlu1 %231  ;;  %v343_v1 = vsub.f32 1.5, %v342_v50 }
 0x12f   :  { %v630_v34 = vpop.eup %629  ;;  %v818_v36 = vadd.f32 1e-12, %v232_v32  ;;  %v230_v37 = vpop.xlane.xlu0 %229 }
 0x130   :  { %v820_v38 = vpop.eup %631  ;;  %v310_v40 = vmul.f32 %v630_v34, %v804_v17  ;;  %v823_v43 = vadd.f32 1e-12, %v230_v37  ;;  %vm316_vm7 = vweird.f32 %v630_v34  ;;  %v268_v17 = vsel %vm861_vm9, %v796_v10, %v264_v60 }
 0x131   :  { %v825_v44 = vpop.eup %633  ;;  %637 = vrsqrt.f32 %v818_v36  ;;  %v845_v61 = vmul.f32 %v820_v38, %v800_v13  ;;  %vm317_vm10 = vmor %vm315_vm8, %vm316_vm7  ;;  %v344_v26 = vmul.f32 %v802_v16, %v343_v1  ;;  %v419_v37 = vmul.f32 %v268_v17, %v726_v19 }
 0x132   :  { %v636_v47 = vpop.eup %635  ;;  %v311_v52 = vmul.f32 %v630_v34, %v310_v40  ;;  %639 = vrsqrt.f32 %v823_v43  ;;  %v280_v56 = vmul.f32 %v825_v44, %v806_v18  ;;  %vm286_vm15 = vweird.f32 %v825_v44 }
 0x133   :  { %v270_v53 = vmul.f32 %v636_v47, %v808_v23  ;;  %vm276_vm11 = vweird.f32 %v636_v47  ;;  %vm365_vm2 = vweird.f32 %v818_v36  ;;  %vm355_vm3 = vweird.f32 %v823_v43 }
 0x134   :  { %v312_v55 = vmul.f32 0.5, %v311_v52  ;;  %v281_v22 = vmul.f32 %v825_v44, %v280_v56  ;;  %vm277_vm13 = vmor %vm275_vm12, %vm276_vm11  ;;  %v348_v52 = vsel %vm888_vm14, %v802_v16, %v344_v26 }
 0x135   :  { %v271_v62 = vmul.f32 %v636_v47, %v270_v53  ;;  %v234_v0 = vpop.xlane.xlu2 %233 }
 0x136   :  { %v313_v2 = vsub.f32 1.5, %v312_v55  ;;  %v847_v3 = vadd.f32 1e-12, %v234_v0  ;;  %v218_v5 = vpop.xlane.xlu1 %217  ;;  %v282_v39 = vmul.f32 0.5, %v281_v22 }
 0x137   :  { %v849_v6 = vpop.eup %637  ;;  %v272_v9 = vmul.f32 0.5, %v271_v62  ;;  %v853_v11 = vadd.f32 1e-12, %v218_v5  ;;  %v224_v12 = vpop.xlane.xlu0 %223 }
 0x138   :  { %v855_v14 = vpop.eup %639  ;;  %v314_v21 = vmul.f32 %v630_v34, %v313_v2  ;;  %v360_v20 = vmul.f32 %v849_v6, %v818_v36  ;;  %641 = vrsqrt.f32 %v847_v3  ;;  %v882_v45 = vadd.f32 1e-12, %v224_v12 }
 0x139   :  { %v273_v24 = vsub.f32 1.5, %v272_v9  ;;  %v350_v4 = vmul.f32 %v855_v14, %v823_v43  ;;  %643 = vrsqrt.f32 %v853_v11  ;;  %vm356_vm1 = vweird.f32 %v855_v14 }
 0x13a   :  { %v318_v28 = vsel %vm317_vm10, %v630_v34, %v314_v21  ;;  %v361_v29 = vmul.f32 %v849_v6, %v360_v20  ;;  %645 = vrsqrt.f32 %v882_v45  ;;  %vm366_vm4 = vweird.f32 %v849_v6  ;;  %vm357_vm5 = vmor %vm355_vm3, %vm356_vm1 }
 0x13b   :  { %v424_v30 = vmul.f32 %v318_v28, %v742_v31  ;;  %v274_v32 = vmul.f32 %v636_v47, %v273_v24  ;;  %v351_v10 = vmul.f32 %v855_v14, %v350_v4  ;;  %v427_v43 = vmul.f32 %v348_v52, %v734_v25  ;;  %vm940_vm7 = vmor %vm365_vm2, %vm366_vm4 }
 0x13c   :  { %v362_v40 = vmul.f32 0.5, %v361_v29  ;;  %vm375_vm6 = vweird.f32 %v847_v3  ;;  %vm956_vm10 = vmor %vm285_vm0, %vm286_vm15  ;;  %vm295_vm12 = vweird.f32 %v853_v11  ;;  %vm325_vm15 = vweird.f32 %v882_v45 }
 0x13d   :  { %v564_v31 = vpack.c.bf16 %v424_v30, %v423_v7  ;;  %v278_v23 = vsel %vm277_vm13, %v636_v47, %v274_v32  ;;  %v352_v46 = vmul.f32 0.5, %v351_v10  ;;  %v240_v50 = vpop.xlane.xlu2 %239 }
 0x13e   :  { %v893_v19 = vpop.eup %641  ;;  %v420_v8 = vmul.f32 %v278_v23, %v744_v33  ;;  %v363_v53 = vsub.f32 1.5, %v362_v40  ;;  %v226_v54 = vpop.xlane.xlu1 %225  ;;  %v907_v56 = vadd.f32 1e-12, %v240_v50  ;;  %v283_v33 = vsub.f32 1.5, %v282_v39 }
 0x13f   :  { %592 = vst [vmem:[%s1050_s3 + $0x10] sm:$0xff] %v564_v31   ;;  %v353_v47 = vsub.f32 1.5, %v352_v46  ;;  %v370_v55 = vmul.f32 %v893_v19, %v847_v3  ;;  %v242_v16 = vpop.xlane.xlu0 %241  ;;  %v909_v60 = vpop.eup %643  ;;  %v912_v0 = vadd.f32 1e-12, %v226_v54  ;;  %vm376_vm8 = vweird.f32 %v893_v19 }
 0x140   :  { %v554_v62 = vpack.c.bf16 %v420_v8, %v419_v37  ;;  %v290_v5 = vmul.f32 %v909_v60, %v853_v11  ;;  %v364_v7 = vmul.f32 %v849_v6, %v363_v53  ;;  %647 = vrsqrt.f32 %v907_v56  ;;  %v932_v22 = vpop.eup %645  ;;  %vm377_vm11 = vmor %vm375_vm6, %vm376_vm8 }
 0x141   :  { %v354_v1 = vmul.f32 %v855_v14, %v353_v47  ;;  %v371_v2 = vmul.f32 %v893_v19, %v370_v55  ;;  %v927_v9 = vadd.f32 1e-12, %v242_v16  ;;  %v284_v20 = vmul.f32 %v825_v44, %v283_v33 }
 0x142   :  { %555 = vst [vmem:[%s1050_s3] sm:$0xff] %v554_v62   ;;  %v291_v21 = vmul.f32 %v909_v60, %v290_v5  ;;  %649 = vrsqrt.f32 %v912_v0  ;;  %v320_v4 = vmul.f32 %v932_v22, %v882_v45  ;;  %vm296_vm9 = vweird.f32 %v909_v60 }
 0x143   :  { %v358_v12 = vsel %vm357_vm5, %v855_v14, %v354_v1  ;;  %v372_v15 = vmul.f32 0.5, %v371_v2  ;;  %651 = vrsqrt.f32 %v927_v9  ;;  %v381_v37 = vmul.f32 %v820_v38, %v845_v61  ;;  %vm297_vm13 = vmor %vm295_vm12, %vm296_vm9 }
 0x144   :  { %v428_v17 = vmul.f32 %v358_v12, %v754_v41  ;;  %v292_v14 = vmul.f32 0.5, %v291_v21  ;;  %v368_v41 = vsel %vm940_vm7, %v849_v6, %v364_v7  ;;  %v321_v32 = vmul.f32 %v932_v22, %v320_v4 }
 0x145   :  { %v373_v25 = vsub.f32 1.5, %v372_v15  ;;  %v288_v18 = vsel %vm956_vm10, %v825_v44, %v284_v20  ;;  %v429_v31 = vmul.f32 %v368_v41, %v756_v42  ;;  %v382_v52 = vmul.f32 0.5, %v381_v37 }
 0x146   :  { %v574_v26 = vpack.c.bf16 %v428_v17, %v427_v43  ;;  %v238_v36 = vpop.xlane.xlu1 %237  ;;  %v293_v30 = vsub.f32 1.5, %v292_v14  ;;  %v964_v10 = vpop.eup %647  ;;  %v322_v61 = vmul.f32 0.5, %v321_v32  ;;  %v421_v8 = vmul.f32 %v288_v18, %v746_v35 }
 0x147   :  { %v374_v29 = vmul.f32 %v893_v19, %v373_v25  ;;  %v962_v6 = vadd.f32 1e-12, %v238_v36  ;;  %v400_v34 = vmul.f32 %v964_v10, %v907_v56  ;;  %vm326_vm14 = vweird.f32 %v932_v22 }
 0x148   :  { %594 = vst [vmem:[%s1050_s3 + $0x20] sm:$0xff] %v574_v26   ;;  %v294_v40 = vmul.f32 %v909_v60, %v293_v30  ;;  %v650_v44 = vpop.eup %649  ;;  %v323_v11 = vsub.f32 1.5, %v322_v61  ;;  %v383_v1 = vsub.f32 1.5, %v382_v52  ;;  %vm406_vm0 = vweird.f32 %v964_v10  ;;  %vm1008_vm2 = vmor %vm325_vm15, %vm326_vm14 }
 0x149   :  { %v378_v39 = vsel %vm377_vm11, %v893_v19, %v374_v29  ;;  %653 = vrsqrt.f32 %v962_v6  ;;  %v401_v46 = vmul.f32 %v964_v10, %v400_v34  ;;  %v330_v50 = vmul.f32 %v650_v44, %v912_v0  ;;  %v652_v19 = vpop.eup %651 }
 0x14a   :  { %v430_v23 = vmul.f32 %v378_v39, %v766_v51  ;;  %v298_v3 = vsel %vm297_vm13, %v909_v60, %v294_v40  ;;  %v410_v47 = vmul.f32 %v652_v19, %v927_v9  ;;  %v324_v16 = vmul.f32 %v932_v22, %v323_v11 }
 0x14b   :  { %v422_v42 = vmul.f32 %v298_v3, %v764_v49  ;;  %v402_v51 = vmul.f32 0.5, %v401_v46  ;;  %v331_v54 = vmul.f32 %v650_v44, %v330_v50  ;;  %vm336_vm1 = vweird.f32 %v650_v44 }
 0x14c   :  { %v579_v53 = vpack.c.bf16 %v430_v23, %v429_v31  ;;  %v411_v62 = vmul.f32 %v652_v19, %v410_v47  ;;  %vm405_vm3 = vweird.f32 %v907_v56  ;;  %vm335_vm4 = vweird.f32 %v912_v0 }
 0x14d   :  { %v559_v55 = vpack.c.bf16 %v422_v42, %v421_v8  ;;  %v403_v60 = vsub.f32 1.5, %v402_v51  ;;  %v332_v33 = vmul.f32 0.5, %v331_v54  ;;  %vm416_vm5 = vweird.f32 %v652_v19  ;;  %vm1017_vm6 = vmor %vm405_vm3, %vm406_vm0 }
 0x14e   :  { %595 = vst [vmem:[%s1050_s3 + $0x28] sm:$0xff] %v579_v53   ;;  %v412_v5 = vmul.f32 0.5, %v411_v62  ;;  %v328_v45 = vsel %vm1008_vm2, %v932_v22, %v324_v16  ;;  %v384_v17 = vmul.f32 %v820_v38, %v383_v1  ;;  %vm385_vm7 = vweird.f32 %v800_v13  ;;  %vm337_vm9 = vmor %vm335_vm4, %vm336_vm1 }
 0x14f   :  { %v654_v35 = vpop.eup %653  ;;  %591 = vst [vmem:[%s1050_s3 + $0x8] sm:$0xff] %v559_v55   ;;  %v404_v49 = vmul.f32 %v964_v10, %v403_v60  ;;  %v333_v2 = vsub.f32 1.5, %v332_v33  ;;  %vm386_vm8 = vweird.f32 %v820_v38  ;;  %vm415_vm10 = vweird.f32 %v927_v9 }
 0x150   :  { %v390_v7 = vmul.f32 %v654_v35, %v962_v6  ;;  %v413_v21 = vsub.f32 1.5, %v412_v5  ;;  %v425_v25 = vmul.f32 %v328_v45, %v762_v48  ;;  %vm417_vm11 = vmor %vm415_vm10, %vm416_vm5  ;;  %vm396_vm12 = vweird.f32 %v654_v35 }
 0x151   :  { %v334_v15 = vmul.f32 %v650_v44, %v333_v2  ;;  %v408_v56 = vsel %vm1017_vm6, %v964_v10, %v404_v49  ;;  %vm387_vm13 = vmor %vm385_vm7, %vm386_vm8  ;;  %vm395_vm14 = vweird.f32 %v962_v6 }
 0x152   :  { %v391_v20 = vmul.f32 %v654_v35, %v390_v7  ;;  %v414_v22 = vmul.f32 %v652_v19, %v413_v21  ;;  %v433_v41 = vmul.f32 %v408_v56, %v774_v57  ;;  %v388_v36 = vsel %vm387_vm13, %v820_v38, %v384_v17  ;;  %vm397_vm15 = vmor %vm395_vm14, %vm396_vm12 }
 0x153   :  { %v338_v0 = vsel %vm337_vm9, %v650_v44, %v334_v15  ;;  %v431_v29 = vmul.f32 %v388_v36, %v736_v27 }
 0x154   :  { %v392_v24 = vmul.f32 0.5, %v391_v20  ;;  %v426_v14 = vmul.f32 %v338_v0, %v778_v59  ;;  %v418_v13 = vsel %vm417_vm11, %v652_v19, %v414_v22 }
 0x155   :  { %v434_v26 = vmul.f32 %v418_v13, %v776_v58 }
 0x156   :  { %v393_v4 = vsub.f32 1.5, %v392_v24  ;;  %v569_v9 = vpack.c.bf16 %v426_v14, %v425_v25 }
 0x157   :  { %v589_v48 = vpack.c.bf16 %v434_v26, %v433_v41 }
 0x158   :  { %v394_v28 = vmul.f32 %v654_v35, %v393_v4  ;;  %593 = vst [vmem:[%s1050_s3 + $0x18] sm:$0xff] %v569_v9  }
 0x159   :  { %597 = vst [vmem:[%s1050_s3 + $0x38] sm:$0xff] %v589_v48  }
 0x15a   :  { %v398_v59 = vsel %vm397_vm15, %v654_v35, %v394_v28 }
 0x15b   :  { %v432_v57 = vmul.f32 %v398_v59, %v786_v63 }
 0x15d   :  { %v584_v58 = vpack.c.bf16 %v432_v57, %v431_v29 }
 0x15f   :  { %596 = vst [vmem:[%s1050_s3 + $0x30] sm:$0xff] %v584_v58  }

// kernel: hgcn_forward.3
= control target key start
LH: loop header
LB: loop body
LE: loop exit
PB: predicated region body
PF: predicated region fallthrough
CT: control target
= control target key end

     0   :  { %s1740_s1 = inlined_call_operand.vmem [shape: bf16[128,128], index: 1, kind: input, shape index: {}]   ;;  %s1741_s0 = inlined_call_operand.vmem [shape: bf16[128,128], index: 0, kind: input, shape index: {}]   ;;  %s1742_s2 = inlined_call_operand.vmem [shape: bf16[128,128], index: 2, kind: input, shape index: {}]   ;;  %s1743_s3 = inlined_call_operand.vmem [shape: f32[1,128], index: 3, kind: input, shape index: {}]   ;;  %s1744_s4 = inlined_call_operand.vmem [shape: bf16[128,128], index: 4, kind: input, shape index: {}]   ;;  %s1745_s5 = inlined_call_operand.vmem [shape: f32[1,128], index: 5, kind: input, shape index: {}]   ;;  %s1746_s6 = inlined_call_operand.vmem [shape: f32[128,128], index: 6, kind: output, shape index: {}]  }
   0x1   :  { %v1196_v0 = vld [vmem:[%s1740_s1 + $0x38] sm:$0xff]  ;;  %v1195_v1 = vld [vmem:[%s1740_s1 + $0x30] sm:$0xff]  ;;  %v1194_v2 = vld [vmem:[%s1740_s1 + $0x28] sm:$0xff] }
   0x2   :  { %187 = vmatpush.bf16.msra.mxu0 %v1196_v0  ;;  %1213 = vmatpush.bf16.msra.mxu3 %v1196_v0  ;;  %v1193_v3 = vld [vmem:[%s1740_s1 + $0x20] sm:$0xff]  ;;  %v1192_v4 = vld [vmem:[%s1740_s1 + $0x18] sm:$0xff]  ;;  %v1191_v5 = vld [vmem:[%s1740_s1 + $0x10] sm:$0xff] }
   0x3   :  { %v1190_v6 = vld [vmem:[%s1740_s1 + $0x8] sm:$0xff]  ;;  %v1189_v7 = vld [vmem:[%s1740_s1] sm:$0xff]  ;;  %v1187_v9 = vld [vmem:[%s1741_s0 + $0x30] sm:$0xff] }
   0x4   :  { %v1181_v8 = vld [vmem:[%s1741_s0] sm:$0xff]  ;;  %v1182_v10 = vld [vmem:[%s1741_s0 + $0x8] sm:$0xff]  ;;  %v1188_v11 = vld [vmem:[%s1741_s0 + $0x38] sm:$0xff] }
   0x5   :  { %v1183_v12 = vld [vmem:[%s1741_s0 + $0x10] sm:$0xff]  ;;  %v1184_v13 = vld [vmem:[%s1741_s0 + $0x18] sm:$0xff]  ;;  %v1202_v16 = vld [vmem:[%s1742_s2 + $0x28] sm:$0xff] }
   0x6   :  { %188 = vmatpush.bf16.msra.mxu0 %v1195_v1  ;;  %1214 = vmatpush.bf16.msra.mxu3 %v1195_v1  ;;  %v1204_v14 = vld [vmem:[%s1742_s2 + $0x38] sm:$0xff]  ;;  %v1203_v15 = vld [vmem:[%s1742_s2 + $0x30] sm:$0xff]  ;;  %v1201_v17 = vld [vmem:[%s1742_s2 + $0x20] sm:$0xff] }
   0x7   :  { %363 = vmatpush.bf16.msra.mxu1 %v1204_v14  ;;  %v1185_v18 = vld [vmem:[%s1741_s0 + $0x20] sm:$0xff]  ;;  %v1200_v19 = vld [vmem:[%s1742_s2 + $0x18] sm:$0xff]  ;;  %v1186_v20 = vld [vmem:[%s1741_s0 + $0x28] sm:$0xff] }
   0x8   :  { %v1199_v21 = vld [vmem:[%s1742_s2 + $0x10] sm:$0xff]  ;;  %v1198_v22 = vld [vmem:[%s1742_s2 + $0x8] sm:$0xff]  ;;  %v1197_v23 = vld [vmem:[%s1742_s2] sm:$0xff] }
   0x9   :  { %v1237_v48 = vld [vmem:[%s1743_s3] ss:$0 sm:$0xff] }
   0xa   :  { %189 = vmatpush.bf16.msra.mxu0 %v1194_v2  ;;  %1215 = vmatpush.bf16.msra.mxu3 %v1194_v2 }
   0xb   :  { %364 = vmatpush.bf16.msra.mxu1 %v1203_v15 }
   0xe   :  { %190 = vmatpush.bf16.msra.mxu0 %v1193_v3  ;;  %1216 = vmatpush.bf16.msra.mxu3 %v1193_v3 }
   0xf   :  { %365 = vmatpush.bf16.msra.mxu1 %v1202_v16 }
  0x12   :  { %191 = vmatpush.bf16.msra.mxu0 %v1192_v4  ;;  %1217 = vmatpush.bf16.msra.mxu3 %v1192_v4 }
  0x13   :  { %366 = vmatpush.bf16.msra.mxu1 %v1201_v17 }
  0x16   :  { %192 = vmatpush.bf16.msra.mxu0 %v1191_v5  ;;  %1218 = vmatpush.bf16.msra.mxu3 %v1191_v5 }
  0x17   :  { %367 = vmatpush.bf16.msra.mxu1 %v1200_v19 }
  0x1a   :  { %193 = vmatpush.bf16.msra.mxu0 %v1190_v6  ;;  %1219 = vmatpush.bf16.msra.mxu3 %v1190_v6 }
  0x1b   :  { %368 = vmatpush.bf16.msra.mxu1 %v1199_v21 }
  0x1e   :  { %194 = vmatpush.bf16.msra.mxu0 %v1189_v7  ;;  %1220 = vmatpush.bf16.msra.mxu3 %v1189_v7 }
  0x1f   :  { %369 = vmatpush.bf16.msra.mxu1 %v1198_v22 }
  0x21   :  { %195 = vmatmul.bf16.vlgmr.msra.gmra.mxu0 %v1181_v8  ;;  %225 = vmatmul.bf16.vlgmr.msra.gmra.mxu3 %v1187_v9 }
  0x22   :  { %1221 = vmatpush.bf16.msrb.mxu3 %v1204_v14 }
  0x23   :  { %370 = vmatpush.bf16.msra.mxu1 %v1197_v23 }
  0x26   :  { %1222 = vmatpush.bf16.msrb.mxu3 %v1203_v15 }
  0x2a   :  { %1223 = vmatpush.bf16.msrb.mxu3 %v1202_v16 }
  0x2e   :  { %1224 = vmatpush.bf16.msrb.mxu3 %v1201_v17 }
  0x31   :  { %200 = vmatmul.bf16.gmra.mxu0 %v1182_v10  ;;  %230 = vmatmul.bf16.gmra.mxu3 %v1188_v11 }
  0x32   :  { %1225 = vmatpush.bf16.msrb.mxu3 %v1200_v19 }
  0x36   :  { %1226 = vmatpush.bf16.msrb.mxu3 %v1199_v21 }
  0x3a   :  { %1227 = vmatpush.bf16.msrb.mxu3 %v1198_v22 }
  0x3e   :  { %1228 = vmatpush.bf16.msrb.mxu3 %v1197_v23 }
  0x41   :  { %205 = vmatmul.bf16.gmra.mxu0 %v1183_v12 }
  0x51   :  { %210 = vmatmul.bf16.gmra.mxu0 %v1184_v13 }
  0x61   :  { %215 = vmatmul.bf16.gmra.mxu0 %v1185_v18 }
  0x71   :  { %220 = vmatmul.bf16.gmra.mxu0 %v1186_v20 }
  0x9e   :  { %v196_v24 = vpop.f32.mrf.mxu0 }
  0xa4   :  { %v226_v27 = vpop.f32.mrf.mxu3 }
  0xa6   :  { %v198_v25 = vpop.f32.mrf.mxu0 }
  0xa7   :  { %v287_v26 = vpack.c.bf16 %v198_v25, %v196_v24 }
  0xa9   :  { %371 = vmatmul.bf16.vlgmr.msra.gmra.mxu1 %v287_v26 }
  0xac   :  { %v228_v29 = vpop.f32.mrf.mxu3 }
  0xad   :  { %v293_v30 = vpack.c.bf16 %v228_v29, %v226_v27 }
  0xae   :  { %v201_v28 = vpop.f32.mrf.mxu0 }
  0xaf   :  { %401 = vmatmul.bf16.vlgmr.msrb.gmra.mxu3 %v293_v30  ;;  %v1212_v30 = vld [vmem:[%s1744_s4 + $0x38] sm:$0xff] }
  0xb0   :  { %728 = vmatpush.bf16.msra.mxu2 %v1212_v30  ;;  %1229 = vmatpush.bf16.msra.mxu3 %v1212_v30 }
  0xb4   :  { %v231_v34 = vpop.f32.mrf.mxu3 }
  0xb6   :  { %v203_v31 = vpop.f32.mrf.mxu0 }
  0xb7   :  { %v288_v32 = vpack.c.bf16 %v203_v31, %v201_v28 }
  0xb9   :  { %376 = vmatmul.bf16.gmra.mxu1 %v288_v32 }
  0xbc   :  { %v233_v37 = vpop.f32.mrf.mxu3 }
  0xbd   :  { %v294_v38 = vpack.c.bf16 %v233_v37, %v231_v34  ;;  %v1211_v34 = vld [vmem:[%s1744_s4 + $0x30] sm:$0xff]  ;;  %v1208_v37 = vld [vmem:[%s1744_s4 + $0x18] sm:$0xff] }
  0xbe   :  { %v206_v33 = vpop.f32.mrf.mxu0  ;;  %729 = vmatpush.bf16.msra.mxu2 %v1211_v34  ;;  %1230 = vmatpush.bf16.msra.mxu3 %v1211_v34 }
  0xbf   :  { %406 = vmatmul.bf16.gmra.mxu3 %v294_v38  ;;  %v1207_v38 = vld [vmem:[%s1744_s4 + $0x10] sm:$0xff] }
  0xc6   :  { %v208_v35 = vpop.f32.mrf.mxu0 }
  0xc7   :  { %v289_v36 = vpack.c.bf16 %v208_v35, %v206_v33  ;;  %v1210_v35 = vld [vmem:[%s1744_s4 + $0x28] sm:$0xff] }
  0xc8   :  { %730 = vmatpush.bf16.msra.mxu2 %v1210_v35  ;;  %1231 = vmatpush.bf16.msra.mxu3 %v1210_v35 }
  0xc9   :  { %381 = vmatmul.bf16.gmra.mxu1 %v289_v36  ;;  %v1209_v36 = vld [vmem:[%s1744_s4 + $0x20] sm:$0xff] }
  0xcc   :  { %731 = vmatpush.bf16.msra.mxu2 %v1209_v36  ;;  %1232 = vmatpush.bf16.msra.mxu3 %v1209_v36 }
  0xce   :  { %v211_v39 = vpop.f32.mrf.mxu0 }
  0xd0   :  { %732 = vmatpush.bf16.msra.mxu2 %v1208_v37  ;;  %1233 = vmatpush.bf16.msra.mxu3 %v1208_v37 }
  0xd4   :  { %733 = vmatpush.bf16.msra.mxu2 %v1207_v38  ;;  %1234 = vmatpush.bf16.msra.mxu3 %v1207_v38 }
  0xd6   :  { %v213_v40 = vpop.f32.mrf.mxu0 }
  0xd7   :  { %v290_v41 = vpack.c.bf16 %v213_v40, %v211_v39  ;;  %v1206_v39 = vld [vmem:[%s1744_s4 + $0x8] sm:$0xff]  ;;  %v1205_v40 = vld [vmem:[%s1744_s4] sm:$0xff] }
  0xd8   :  { %734 = vmatpush.bf16.msra.mxu2 %v1206_v39  ;;  %1235 = vmatpush.bf16.msra.mxu3 %v1206_v39 }
  0xd9   :  { %386 = vmatmul.bf16.gmra.mxu1 %v290_v41 }
  0xdc   :  { %735 = vmatpush.bf16.msra.mxu2 %v1205_v40  ;;  %1236 = vmatpush.bf16.msra.mxu3 %v1205_v40 }
  0xde   :  { %v216_v42 = vpop.f32.mrf.mxu0 }
  0xe6   :  { %v218_v43 = vpop.f32.mrf.mxu0 }
  0xe7   :  { %v291_v44 = vpack.c.bf16 %v218_v43, %v216_v42 }
  0xe9   :  { %391 = vmatmul.bf16.gmra.mxu1 %v291_v44 }
  0xee   :  { %v221_v45 = vpop.f32.mrf.mxu0 }
  0xf6   :  { %v223_v46 = vpop.f32.mrf.mxu0 }
  0xf7   :  { %v292_v47 = vpack.c.bf16 %v223_v46, %v221_v45 }
  0xf9   :  { %396 = vmatmul.bf16.gmra.mxu1 %v292_v47 }
 0x126   :  { %v372_v49 = vpop.f32.mrf.mxu1 }
 0x127   :  { %v1413_v50 = vadd.f32 %v1237_v48, %v372_v49 }
 0x129   :  { %v412_v51 = vmul.f32 %v1413_v50, %v1413_v50 }
 0x12b   :  { %428 = vadd.xlane.f32.xlu0 %v412_v51 }
 0x12e   :  { %v374_v52 = vpop.f32.mrf.mxu1 }
 0x12f   :  { %v1417_v53 = vadd.f32 %v1237_v48, %v374_v52 }
 0x131   :  { %v413_v54 = vmul.f32 %v1417_v53, %v1417_v53 }
 0x132   :  { %v402_v6 = vpop.f32.mrf.mxu3 }
 0x133   :  { %430 = vadd.xlane.f32.xlu0 %v413_v54  ;;  %v1445_v10 = vadd.f32 %v1237_v48, %v402_v6 }
 0x135   :  { %v424_v14 = vmul.f32 %v1445_v10, %v1445_v10 }
 0x136   :  { %v377_v55 = vpop.f32.mrf.mxu1 }
 0x137   :  { %v1421_v56 = vadd.f32 %v1237_v48, %v377_v55 }
 0x139   :  { %v414_v57 = vmul.f32 %v1421_v56, %v1421_v56 }
 0x13a   :  { %v404_v13 = vpop.f32.mrf.mxu3 }
 0x13b   :  { %432 = vadd.xlane.f32.xlu1 %v414_v57  ;;  %v1453_v16 = vadd.f32 %v1237_v48, %v404_v13 }
 0x13d   :  { %v425_v21 = vmul.f32 %v1453_v16, %v1453_v16 }
 0x13e   :  { %v379_v58 = vpop.f32.mrf.mxu1 }
 0x13f   :  { %v1425_v59 = vadd.f32 %v1237_v48, %v379_v58 }
 0x141   :  { %v415_v60 = vmul.f32 %v1425_v59, %v1425_v59 }
 0x142   :  { %v407_v19 = vpop.f32.mrf.mxu3 }
 0x143   :  { %434 = vadd.xlane.f32.xlu1 %v415_v60  ;;  %v1461_v22 = vadd.f32 %v1237_v48, %v407_v19 }
 0x145   :  { %v426_v25 = vmul.f32 %v1461_v22, %v1461_v22 }
 0x146   :  { %v382_v61 = vpop.f32.mrf.mxu1 }
 0x147   :  { %v1429_v62 = vadd.f32 %v1237_v48, %v382_v61 }
 0x149   :  { %v416_v63 = vmul.f32 %v1429_v62, %v1429_v62 }
 0x14a   :  { %v409_v27 = vpop.f32.mrf.mxu3 }
 0x14b   :  { %436 = vadd.xlane.f32.xlu2 %v416_v63  ;;  %v1469_v28 = vadd.f32 %v1237_v48, %v409_v27 }
 0x14d   :  { %v427_v33 = vmul.f32 %v1469_v28, %v1469_v28 }
 0x14e   :  { %v384_v0 = vpop.f32.mrf.mxu1 }
 0x14f   :  { %v1433_v1 = vadd.f32 %v1237_v48, %v384_v0 }
 0x151   :  { %v417_v2 = vmul.f32 %v1433_v1, %v1433_v1 }
 0x153   :  { %438 = vadd.xlane.f32.xlu2 %v417_v2 }
 0x156   :  { %v387_v3 = vpop.f32.mrf.mxu1 }
 0x157   :  { %v1437_v4 = vadd.f32 %v1237_v48, %v387_v3 }
 0x159   :  { %v418_v5 = vmul.f32 %v1437_v4, %v1437_v4 }
 0x15b   :  { %440 = vadd.xlane.f32.xlu0 %v418_v5 }
 0x15e   :  { %v389_v7 = vpop.f32.mrf.mxu1 }
 0x15f   :  { %v1441_v8 = vadd.f32 %v1237_v48, %v389_v7 }
 0x161   :  { %v419_v9 = vmul.f32 %v1441_v8, %v1441_v8 }
 0x163   :  { %442 = vadd.xlane.f32.xlu1 %v419_v9 }
 0x166   :  { %v392_v11 = vpop.f32.mrf.mxu1 }
 0x167   :  { %v1447_v12 = vadd.f32 %v1237_v48, %v392_v11 }
 0x169   :  { %v420_v15 = vmul.f32 %v1447_v12, %v1447_v12 }
 0x16b   :  { %452 = vadd.xlane.f32.xlu1 %v424_v14  ;;  %444 = vadd.xlane.f32.xlu2 %v420_v15 }
 0x16e   :  { %v394_v17 = vpop.f32.mrf.mxu1 }
 0x16f   :  { %v1455_v18 = vadd.f32 %v1237_v48, %v394_v17 }
 0x171   :  { %v421_v20 = vmul.f32 %v1455_v18, %v1455_v18 }
 0x173   :  { %446 = vadd.xlane.f32.xlu0 %v421_v20  ;;  %454 = vadd.xlane.f32.xlu2 %v425_v21 }
 0x176   :  { %v397_v23 = vpop.f32.mrf.mxu1 }
 0x177   :  { %v1463_v24 = vadd.f32 %v1237_v48, %v397_v23 }
 0x179   :  { %v422_v26 = vmul.f32 %v1463_v24, %v1463_v24 }
 0x17b   :  { %456 = vadd.xlane.f32.xlu2 %v426_v25  ;;  %448 = vadd.xlane.f32.xlu0 %v422_v26 }
 0x17e   :  { %v399_v29 = vpop.f32.mrf.mxu1 }
 0x17f   :  { %v1474_v31 = vadd.f32 %v1237_v48, %v399_v29 }
 0x181   :  { %v423_v32 = vmul.f32 %v1474_v31, %v1474_v31 }
 0x183   :  { %450 = vadd.xlane.f32.xlu1 %v423_v32  ;;  %458 = vadd.xlane.f32.xlu0 %v427_v33 }
 0x19e   :  { %v429_v41 = vpop.xlane.xlu0 %428 }
 0x19f   :  { %v460_v42 = vadd.f32 1e-12, %v429_v41 }
 0x1a1   :  { %1239 = vrsqrt.f32 %v460_v42  ;;  %vm482_vm1 = vweird.f32 %v460_v42 }
 0x1a6   :  { %v431_v43 = vpop.xlane.xlu0 %430 }
 0x1a7   :  { %v1240_v44 = vpop.eup %1239  ;;  %v461_v45 = vadd.f32 1e-12, %v431_v43 }
 0x1a8   :  { %v477_v46 = vmul.f32 %v1240_v44, %v460_v42  ;;  %vm483_vm0 = vweird.f32 %v1240_v44 }
 0x1a9   :  { %1241 = vrsqrt.f32 %v461_v45  ;;  %vm484_vm3 = vmor %vm482_vm1, %vm483_vm0  ;;  %vm492_vm4 = vweird.f32 %v461_v45 }
 0x1aa   :  { %v478_v47 = vmul.f32 %v1240_v44, %v477_v46 }
 0x1ac   :  { %v479_v48 = vmul.f32 0.5, %v478_v47 }
 0x1ae   :  { %v433_v49 = vpop.xlane.xlu1 %432  ;;  %v480_v54 = vsub.f32 1.5, %v479_v48 }
 0x1af   :  { %v1242_v51 = vpop.eup %1241  ;;  %v462_v52 = vadd.f32 1e-12, %v433_v49 }
 0x1b0   :  { %v487_v55 = vmul.f32 %v1242_v51, %v461_v45  ;;  %v481_v60 = vmul.f32 %v1240_v44, %v480_v54  ;;  %vm493_vm2 = vweird.f32 %v1242_v51 }
 0x1b1   :  { %1243 = vrsqrt.f32 %v462_v52  ;;  %vm494_vm5 = vmor %vm492_vm4, %vm493_vm2  ;;  %vm502_vm7 = vweird.f32 %v462_v52 }
 0x1b2   :  { %v488_v57 = vmul.f32 %v1242_v51, %v487_v55  ;;  %v485_v5 = vsel %vm484_vm3, %v1240_v44, %v481_v60 }
 0x1b3   :  { %v636_v11 = vmul.f32 %v485_v5, %v1413_v50 }
 0x1b4   :  { %v489_v58 = vmul.f32 0.5, %v488_v57 }
 0x1b6   :  { %v490_v61 = vsub.f32 1.5, %v489_v58  ;;  %v435_v63 = vpop.xlane.xlu1 %434 }
 0x1b7   :  { %v1244_v0 = vpop.eup %1243  ;;  %v463_v2 = vadd.f32 1e-12, %v435_v63 }
 0x1b8   :  { %v497_v3 = vmul.f32 %v1244_v0, %v462_v52  ;;  %v491_v6 = vmul.f32 %v1242_v51, %v490_v61  ;;  %vm503_vm6 = vweird.f32 %v1244_v0 }
 0x1b9   :  { %1245 = vrsqrt.f32 %v463_v2  ;;  %vm504_vm9 = vmor %vm502_vm7, %vm503_vm6  ;;  %vm512_vm10 = vweird.f32 %v463_v2 }
 0x1ba   :  { %v498_v7 = vmul.f32 %v1244_v0, %v497_v3  ;;  %v495_v9 = vsel %vm494_vm5, %v1242_v51, %v491_v6 }
 0x1bb   :  { %v637_v13 = vmul.f32 %v495_v9, %v1417_v53 }
 0x1bc   :  { %v499_v14 = vmul.f32 0.5, %v498_v7 }
 0x1bd   :  { %v652_v15 = vpack.c.bf16 %v637_v13, %v636_v11 }
 0x1be   :  { %v437_v17 = vpop.xlane.xlu2 %436  ;;  %v500_v21 = vsub.f32 1.5, %v499_v14 }
 0x1bf   :  { %v1246_v19 = vpop.eup %1245  ;;  %v464_v20 = vadd.f32 1e-12, %v437_v17  ;;  %736 = vmatmul.bf16.vlgmr.msra.gmra.mxu2 %v652_v15 }
 0x1c0   :  { %v507_v23 = vmul.f32 %v1246_v19, %v463_v2  ;;  %v501_v27 = vmul.f32 %v1244_v0, %v500_v21  ;;  %vm513_vm8 = vweird.f32 %v1246_v19 }
 0x1c1   :  { %1247 = vrsqrt.f32 %v464_v20  ;;  %vm514_vm11 = vmor %vm512_vm10, %vm513_vm8  ;;  %vm522_vm13 = vweird.f32 %v464_v20 }
 0x1c2   :  { %v508_v25 = vmul.f32 %v1246_v19, %v507_v23  ;;  %v505_v33 = vsel %vm504_vm9, %v1244_v0, %v501_v27 }
 0x1c3   :  { %v638_v37 = vmul.f32 %v505_v33, %v1421_v56 }
 0x1c4   :  { %v509_v26 = vmul.f32 0.5, %v508_v25 }
 0x1c6   :  { %v510_v29 = vsub.f32 1.5, %v509_v26  ;;  %v439_v30 = vpop.xlane.xlu2 %438 }
 0x1c7   :  { %v1248_v50 = vpop.eup %1247  ;;  %v465_v53 = vadd.f32 1e-12, %v439_v30 }
 0x1c8   :  { %v517_v32 = vmul.f32 %v1248_v50, %v464_v20  ;;  %v511_v34 = vmul.f32 %v1246_v19, %v510_v29  ;;  %vm523_vm12 = vweird.f32 %v1248_v50 }
 0x1c9   :  { %1249 = vrsqrt.f32 %v465_v53  ;;  %vm524_vm15 = vmor %vm522_vm13, %vm523_vm12  ;;  %vm532_vm0 = vweird.f32 %v465_v53 }
 0x1ca   :  { %v518_v35 = vmul.f32 %v1248_v50, %v517_v32  ;;  %v515_v36 = vsel %vm514_vm11, %v1246_v19, %v511_v34 }
 0x1cb   :  { %v639_v38 = vmul.f32 %v515_v36, %v1425_v59 }
 0x1cc   :  { %v519_v39 = vmul.f32 0.5, %v518_v35 }
 0x1cd   :  { %v653_v40 = vpack.c.bf16 %v639_v38, %v638_v37 }
 0x1ce   :  { %v441_v41 = vpop.xlane.xlu0 %440  ;;  %v520_v44 = vsub.f32 1.5, %v519_v39 }
 0x1cf   :  { %v1250_v42 = vpop.eup %1249  ;;  %v466_v43 = vadd.f32 1e-12, %v441_v41  ;;  %741 = vmatmul.bf16.gmra.mxu2 %v653_v40 }
 0x1d0   :  { %v527_v45 = vmul.f32 %v1250_v42, %v465_v53  ;;  %v521_v48 = vmul.f32 %v1248_v50, %v520_v44  ;;  %vm533_vm14 = vweird.f32 %v1250_v42 }
 0x1d1   :  { %1251 = vrsqrt.f32 %v466_v43  ;;  %vm534_vm1 = vmor %vm532_vm0, %vm533_vm14  ;;  %vm542_vm3 = vweird.f32 %v466_v43 }
 0x1d2   :  { %v528_v46 = vmul.f32 %v1250_v42, %v527_v45  ;;  %v525_v54 = vsel %vm524_vm15, %v1248_v50, %v521_v48 }
 0x1d3   :  { %v640_v60 = vmul.f32 %v525_v54, %v1429_v62 }
 0x1d4   :  { %v529_v47 = vmul.f32 0.5, %v528_v46 }
 0x1d6   :  { %v530_v49 = vsub.f32 1.5, %v529_v47  ;;  %v443_v51 = vpop.xlane.xlu1 %442 }
 0x1d7   :  { %v1252_v56 = vpop.eup %1251  ;;  %v467_v59 = vadd.f32 1e-12, %v443_v51 }
 0x1d8   :  { %v537_v52 = vmul.f32 %v1252_v56, %v466_v43  ;;  %v531_v55 = vmul.f32 %v1250_v42, %v530_v49  ;;  %vm543_vm2 = vweird.f32 %v1252_v56 }
 0x1d9   :  { %1253 = vrsqrt.f32 %v467_v59  ;;  %vm544_vm5 = vmor %vm542_vm3, %vm543_vm2  ;;  %vm552_vm6 = vweird.f32 %v467_v59 }
 0x1da   :  { %v538_v57 = vmul.f32 %v1252_v56, %v537_v52  ;;  %v535_v58 = vsel %vm534_vm1, %v1250_v42, %v531_v55 }
 0x1db   :  { %v641_v61 = vmul.f32 %v535_v58, %v1433_v1 }
 0x1dc   :  { %v539_v63 = vmul.f32 0.5, %v538_v57 }
 0x1dd   :  { %v654_v0 = vpack.c.bf16 %v641_v61, %v640_v60 }
 0x1de   :  { %v453_v2 = vpop.xlane.xlu1 %452  ;;  %v445_v3 = vpop.xlane.xlu2 %444  ;;  %v540_v9 = vsub.f32 1.5, %v539_v63 }
 0x1df   :  { %v1254_v5 = vpop.eup %1253  ;;  %v1507_v6 = vadd.f32 1e-12, %v453_v2  ;;  %v1509_v7 = vadd.f32 1e-12, %v445_v3  ;;  %746 = vmatmul.bf16.gmra.mxu2 %v654_v0 }
 0x1e0   :  { %v547_v11 = vmul.f32 %v1254_v5, %v467_v59  ;;  %v541_v1 = vmul.f32 %v1252_v56, %v540_v9  ;;  %vm553_vm4 = vweird.f32 %v1254_v5 }
 0x1e1   :  { %1255 = vrsqrt.f32 %v1507_v6  ;;  %vm554_vm7 = vmor %vm552_vm6, %vm553_vm4  ;;  %vm602_vm9 = vweird.f32 %v1507_v6  ;;  %vm562_vm11 = vweird.f32 %v1509_v7 }
 0x1e2   :  { %v548_v13 = vmul.f32 %v1254_v5, %v547_v11  ;;  %1257 = vrsqrt.f32 %v1509_v7  ;;  %v545_v26 = vsel %vm544_vm5, %v1252_v56, %v541_v1 }
 0x1e3   :  { %v642_v32 = vmul.f32 %v545_v26, %v1437_v4 }
 0x1e4   :  { %v549_v62 = vmul.f32 0.5, %v548_v13 }
 0x1e6   :  { %v550_v14 = vsub.f32 1.5, %v549_v62  ;;  %v447_v15 = vpop.xlane.xlu0 %446  ;;  %v455_v17 = vpop.xlane.xlu2 %454 }
 0x1e7   :  { %v1513_v19 = vpop.eup %1255  ;;  %v469_v20 = vadd.f32 1e-12, %v447_v15  ;;  %v1515_v21 = vadd.f32 1e-12, %v455_v17 }
 0x1e8   :  { %v1517_v23 = vpop.eup %1257  ;;  %v597_v25 = vmul.f32 %v1513_v19, %v1507_v6  ;;  %v551_v27 = vmul.f32 %v1254_v5, %v550_v14  ;;  %vm603_vm8 = vweird.f32 %v1513_v19 }
 0x1e9   :  { %v557_v29 = vmul.f32 %v1517_v23, %v1509_v7  ;;  %1259 = vrsqrt.f32 %v469_v20  ;;  %vm563_vm10 = vweird.f32 %v1517_v23  ;;  %vm572_vm12 = vweird.f32 %v469_v20  ;;  %vm1543_vm14 = vmor %vm602_vm9, %vm603_vm8 }
 0x1ea   :  { %v598_v30 = vmul.f32 %v1513_v19, %v597_v25  ;;  %1261 = vrsqrt.f32 %v1515_v21  ;;  %v555_v50 = vsel %vm554_vm7, %v1254_v5, %v551_v27  ;;  %vm1552_vm0 = vmor %vm562_vm11, %vm563_vm10  ;;  %vm612_vm1 = vweird.f32 %v1515_v21 }
 0x1eb   :  { %v558_v53 = vmul.f32 %v1517_v23, %v557_v29  ;;  %v643_v33 = vmul.f32 %v555_v50, %v1441_v8 }
 0x1ec   :  { %v599_v34 = vmul.f32 0.5, %v598_v30 }
 0x1ed   :  { %v559_v35 = vmul.f32 0.5, %v558_v53  ;;  %v655_v36 = vpack.c.bf16 %v643_v33, %v642_v32 }
 0x1ee   :  { %v457_v37 = vpop.xlane.xlu2 %456  ;;  %v449_v38 = vpop.xlane.xlu0 %448  ;;  %v600_v43 = vsub.f32 1.5, %v599_v34 }
 0x1ef   :  { %v1260_v39 = vpop.eup %1259  ;;  %v1528_v40 = vadd.f32 1e-12, %v457_v37  ;;  %v1530_v41 = vadd.f32 1e-12, %v449_v38  ;;  %751 = vmatmul.bf16.gmra.mxu2 %v655_v36  ;;  %v560_v45 = vsub.f32 1.5, %v559_v35 }
 0x1f0   :  { %v1262_v42 = vpop.eup %1261  ;;  %v567_v44 = vmul.f32 %v1260_v39, %v469_v20  ;;  %v601_v47 = vmul.f32 %v1513_v19, %v600_v43  ;;  %vm573_vm13 = vweird.f32 %v1260_v39 }
 0x1f1   :  { %v607_v46 = vmul.f32 %v1262_v42, %v1515_v21  ;;  %1263 = vrsqrt.f32 %v1528_v40  ;;  %v561_v51 = vmul.f32 %v1517_v23, %v560_v45  ;;  %vm613_vm15 = vweird.f32 %v1262_v42  ;;  %vm574_vm2 = vmor %vm572_vm12, %vm573_vm13 }
 0x1f2   :  { %v568_v4 = vmul.f32 %v1260_v39, %v567_v44  ;;  %1265 = vrsqrt.f32 %v1530_v41  ;;  %v605_v63 = vsel %vm1543_vm14, %v1513_v19, %v601_v47  ;;  %vm614_vm3 = vmor %vm612_vm1, %vm613_vm15  ;;  %vm582_vm6 = vweird.f32 %v1530_v41 }
 0x1f3   :  { %v608_v8 = vmul.f32 %v1262_v42, %v607_v46  ;;  %v565_v7 = vsel %vm1552_vm0, %v1517_v23, %v561_v51  ;;  %v648_v1 = vmul.f32 %v605_v63, %v1445_v10  ;;  %vm622_vm8 = vweird.f32 %v1528_v40 }
 0x1f4   :  { %v569_v48 = vmul.f32 0.5, %v568_v4  ;;  %v644_v15 = vmul.f32 %v565_v7, %v1447_v12  ;;  %v1238_v4 = vld [vmem:[%s1745_s5] ss:$0 sm:$0xff] }
 0x1f5   :  { %v609_v49 = vmul.f32 0.5, %v608_v8 }
 0x1f6   :  { %v570_v56 = vsub.f32 1.5, %v569_v48  ;;  %v451_v59 = vpop.xlane.xlu1 %450  ;;  %v459_v52 = vpop.xlane.xlu0 %458 }
 0x1f7   :  { %v1541_v54 = vpop.eup %1263  ;;  %v610_v57 = vsub.f32 1.5, %v609_v49  ;;  %v471_v58 = vadd.f32 1e-12, %v451_v59  ;;  %v475_v60 = vadd.f32 1e-12, %v459_v52 }
 0x1f8   :  { %v1266_v61 = vpop.eup %1265  ;;  %v617_v2 = vmul.f32 %v1541_v54, %v1528_v40  ;;  %v571_v3 = vmul.f32 %v1260_v39, %v570_v56  ;;  %vm623_vm5 = vweird.f32 %v1541_v54 }
 0x1f9   :  { %v611_v5 = vmul.f32 %v1262_v42, %v610_v57  ;;  %v577_v6 = vmul.f32 %v1266_v61, %v1530_v41  ;;  %1267 = vrsqrt.f32 %v471_v58  ;;  %vm583_vm4 = vweird.f32 %v1266_v61  ;;  %vm624_vm11 = vmor %vm622_vm8, %vm623_vm5 }
 0x1fa   :  { %v618_v9 = vmul.f32 %v1541_v54, %v617_v2  ;;  %1269 = vrsqrt.f32 %v475_v60  ;;  %v575_v62 = vsel %vm574_vm2, %v1260_v39, %v571_v3  ;;  %vm584_vm9 = vmor %vm582_vm6, %vm583_vm4  ;;  %vm592_vm12 = vweird.f32 %v471_v58 }
 0x1fb   :  { %v615_v11 = vsel %vm614_vm3, %v1262_v42, %v611_v5  ;;  %v578_v13 = vmul.f32 %v1266_v61, %v577_v6  ;;  %v645_v17 = vmul.f32 %v575_v62, %v1455_v18  ;;  %vm632_vm14 = vweird.f32 %v475_v60 }
 0x1fc   :  { %v649_v14 = vmul.f32 %v615_v11, %v1453_v16  ;;  %v619_v19 = vmul.f32 0.5, %v618_v9 }
 0x1fd   :  { %v579_v20 = vmul.f32 0.5, %v578_v13  ;;  %v656_v21 = vpack.c.bf16 %v645_v17, %v644_v15 }
 0x1fe   :  { %v658_v25 = vpack.c.bf16 %v649_v14, %v648_v1  ;;  %v620_v30 = vsub.f32 1.5, %v619_v19 }
 0x1ff   :  { %v1268_v23 = vpop.eup %1267  ;;  %v580_v27 = vsub.f32 1.5, %v579_v20  ;;  %756 = vmatmul.bf16.gmra.mxu2 %v656_v21 }
 0x200   :  { %v1270_v26 = vpop.eup %1269  ;;  %v587_v29 = vmul.f32 %v1268_v23, %v471_v58  ;;  %766 = vmatmul.bf16.vlgmr.msra.gmra.mxu3 %v658_v25  ;;  %v621_v18 = vmul.f32 %v1541_v54, %v620_v30  ;;  %vm593_vm7 = vweird.f32 %v1268_v23 }
 0x201   :  { %v627_v50 = vmul.f32 %v1270_v26, %v475_v60  ;;  %v581_v32 = vmul.f32 %v1266_v61, %v580_v27  ;;  %vm633_vm10 = vweird.f32 %v1270_v26  ;;  %vm594_vm13 = vmor %vm592_vm12, %vm593_vm7 }
 0x202   :  { %v588_v53 = vmul.f32 %v1268_v23, %v587_v29  ;;  %v625_v37 = vsel %vm624_vm11, %v1541_v54, %v621_v18  ;;  %vm634_vm15 = vmor %vm632_vm14, %vm633_vm10 }
 0x203   :  { %v628_v10 = vmul.f32 %v1270_v26, %v627_v50  ;;  %v585_v35 = vsel %vm584_vm9, %v1266_v61, %v581_v32  ;;  %v650_v40 = vmul.f32 %v625_v37, %v1461_v22 }
 0x204   :  { %v589_v16 = vmul.f32 0.5, %v588_v53  ;;  %v646_v41 = vmul.f32 %v585_v35, %v1463_v24 }
 0x205   :  { %v629_v12 = vmul.f32 0.5, %v628_v10 }
 0x206   :  { %v590_v33 = vsub.f32 1.5, %v589_v16 }
 0x207   :  { %v630_v34 = vsub.f32 1.5, %v629_v12 }
 0x208   :  { %v591_v36 = vmul.f32 %v1268_v23, %v590_v33 }
 0x209   :  { %v631_v38 = vmul.f32 %v1270_v26, %v630_v34 }
 0x20a   :  { %v595_v39 = vsel %vm594_vm13, %v1268_v23, %v591_v36 }
 0x20b   :  { %v647_v42 = vmul.f32 %v595_v39, %v1474_v31  ;;  %v635_v43 = vsel %vm634_vm15, %v1270_v26, %v631_v38 }
 0x20c   :  { %v651_v44 = vmul.f32 %v635_v43, %v1469_v28 }
 0x20d   :  { %v657_v45 = vpack.c.bf16 %v647_v42, %v646_v41 }
 0x20e   :  { %v659_v46 = vpack.c.bf16 %v651_v44, %v650_v40 }
 0x20f   :  { %761 = vmatmul.bf16.gmra.mxu2 %v657_v45 }
 0x210   :  { %771 = vmatmul.bf16.gmra.mxu3 %v659_v46 }
 0x242   :  { %v737_v8 = vpop.f32.mrf.mxu2 }
 0x243   :  { %v1582_v47 = vadd.f32 %v1238_v4, %v737_v8 }
 0x245   :  { %v777_v24 = vmul.f32 %v1582_v47, %v1582_v47 }
 0x247   :  { %793 = vadd.xlane.f32.xlu1 %v777_v24 }
 0x24a   :  { %v739_v31 = vpop.f32.mrf.mxu2 }
 0x24b   :  { %v1586_v48 = vadd.f32 %v1238_v4, %v739_v31 }
 0x24d   :  { %v778_v22 = vmul.f32 %v1586_v48, %v1586_v48 }
 0x24f   :  { %795 = vadd.xlane.f32.xlu2 %v778_v22 }
 0x252   :  { %v742_v28 = vpop.f32.mrf.mxu2 }
 0x253   :  { %v1590_v49 = vadd.f32 %v1238_v4, %v742_v28 }
 0x255   :  { %v779_v51 = vmul.f32 %v1590_v49, %v1590_v49 }
 0x257   :  { %797 = vadd.xlane.f32.xlu0 %v779_v51 }
 0x25a   :  { %v744_v56 = vpop.f32.mrf.mxu2 }
 0x25b   :  { %v1614_v11 = vadd.f32 %v1238_v4, %v744_v56 }
 0x25d   :  { %v780_v1 = vmul.f32 %v1614_v11, %v1614_v11 }
 0x262   :  { %v747_v59 = vpop.f32.mrf.mxu2 }
 0x263   :  { %v1594_v52 = vadd.f32 %v1238_v4, %v747_v59 }
 0x265   :  { %v781_v54 = vmul.f32 %v1594_v52, %v1594_v52 }
 0x267   :  { %801 = vadd.xlane.f32.xlu2 %v781_v54 }
 0x26a   :  { %v749_v55 = vpop.f32.mrf.mxu2 }
 0x26b   :  { %v1598_v57 = vadd.f32 %v1238_v4, %v749_v55 }
 0x26d   :  { %v782_v58 = vmul.f32 %v1598_v57, %v1598_v57 }
 0x26f   :  { %803 = vadd.xlane.f32.xlu0 %v782_v58 }
 0x272   :  { %v752_v60 = vpop.f32.mrf.mxu2 }
 0x273   :  { %v1618_v14 = vadd.f32 %v1238_v4, %v752_v60 }
 0x275   :  { %v783_v20 = vmul.f32 %v1618_v14, %v1618_v14 }
 0x27a   :  { %v754_v61 = vpop.f32.mrf.mxu2 }
 0x27b   :  { %v1602_v63 = vadd.f32 %v1238_v4, %v754_v61 }
 0x27d   :  { %v784_v0 = vmul.f32 %v1602_v63, %v1602_v63 }
 0x27f   :  { %807 = vadd.xlane.f32.xlu2 %v784_v0 }
 0x282   :  { %v757_v2 = vpop.f32.mrf.mxu2 }
 0x283   :  { %v767_v3 = vpop.f32.mrf.mxu3  ;;  %v1606_v5 = vadd.f32 %v1238_v4, %v757_v2 }
 0x284   :  { %v1608_v6 = vadd.f32 %v1238_v4, %v767_v3 }
 0x285   :  { %v785_v9 = vmul.f32 %v1606_v5, %v1606_v5 }
 0x286   :  { %v789_v7 = vmul.f32 %v1608_v6, %v1608_v6 }
 0x287   :  { %809 = vadd.xlane.f32.xlu0 %v785_v9 }
 0x288   :  { %817 = vadd.xlane.f32.xlu1 %v789_v7 }
 0x28a   :  { %v759_v13 = vpop.f32.mrf.mxu2 }
 0x28b   :  { %v769_v62 = vpop.f32.mrf.mxu3  ;;  %v1626_v25 = vadd.f32 %v1238_v4, %v759_v13 }
 0x28c   :  { %v1628_v23 = vadd.f32 %v1238_v4, %v769_v62 }
 0x28d   :  { %v786_v29 = vmul.f32 %v1626_v25, %v1626_v25 }
 0x28e   :  { %v790_v53 = vmul.f32 %v1628_v23, %v1628_v23 }
 0x290   :  { %799 = vadd.xlane.f32.xlu1 %v780_v1 }
 0x292   :  { %v762_v15 = vpop.f32.mrf.mxu2 }
 0x293   :  { %v1620_v17 = vadd.f32 %v1238_v4, %v762_v15  ;;  %v772_v19 = vpop.f32.mrf.mxu3 }
 0x294   :  { %v1638_v10 = vadd.f32 %v1238_v4, %v772_v19 }
 0x295   :  { %v787_v21 = vmul.f32 %v1620_v17, %v1620_v17 }
 0x296   :  { %v791_v12 = vmul.f32 %v1638_v10, %v1638_v10 }
 0x297   :  { %813 = vadd.xlane.f32.xlu2 %v787_v21 }
 0x298   :  { %805 = vadd.xlane.f32.xlu1 %v783_v20 }
 0x29a   :  { %v764_v26 = vpop.f32.mrf.mxu2 }
 0x29b   :  { %v1630_v27 = vadd.f32 %v1238_v4, %v764_v26  ;;  %v774_v50 = vpop.f32.mrf.mxu3 }
 0x29c   :  { %v1640_v16 = vadd.f32 %v1238_v4, %v774_v50 }
 0x29d   :  { %v788_v30 = vmul.f32 %v1630_v27, %v1630_v27 }
 0x29e   :  { %v792_v32 = vmul.f32 %v1640_v16, %v1640_v16 }
 0x29f   :  { %815 = vadd.xlane.f32.xlu0 %v788_v30  ;;  %819 = vadd.xlane.f32.xlu2 %v790_v53 }
 0x2a0   :  { %811 = vadd.xlane.f32.xlu1 %v786_v29 }
 0x2a7   :  { %821 = vadd.xlane.f32.xlu0 %v791_v12 }
 0x2a8   :  { %823 = vadd.xlane.f32.xlu1 %v792_v32 }
 0x2ba   :  { %v794_v18 = vpop.xlane.xlu1 %793 }
 0x2bb   :  { %v825_v33 = vadd.f32 1e-12, %v794_v18 }
 0x2bd   :  { %1271 = vrsqrt.f32 %v825_v33  ;;  %vm847_vm1 = vweird.f32 %v825_v33 }
 0x2c2   :  { %v796_v34 = vpop.xlane.xlu2 %795 }
 0x2c3   :  { %v1272_v35 = vpop.eup %1271  ;;  %v826_v36 = vadd.f32 1e-12, %v796_v34 }
 0x2c4   :  { %v842_v37 = vmul.f32 %v1272_v35, %v825_v33  ;;  %vm848_vm0 = vweird.f32 %v1272_v35 }
 0x2c5   :  { %1273 = vrsqrt.f32 %v826_v36  ;;  %vm849_vm2 = vmor %vm847_vm1, %vm848_vm0  ;;  %vm857_vm4 = vweird.f32 %v826_v36 }
 0x2c6   :  { %v843_v38 = vmul.f32 %v1272_v35, %v842_v37 }
 0x2c8   :  { %v844_v39 = vmul.f32 0.5, %v843_v38 }
 0x2ca   :  { %v845_v41 = vsub.f32 1.5, %v844_v39  ;;  %v798_v42 = vpop.xlane.xlu0 %797 }
 0x2cb   :  { %v1274_v43 = vpop.eup %1273  ;;  %v827_v40 = vadd.f32 1e-12, %v798_v42 }
 0x2cc   :  { %v846_v44 = vmul.f32 %v1272_v35, %v845_v41  ;;  %v852_v45 = vmul.f32 %v1274_v43, %v826_v36  ;;  %vm858_vm3 = vweird.f32 %v1274_v43 }
 0x2cd   :  { %1275 = vrsqrt.f32 %v827_v40  ;;  %vm859_vm5 = vmor %vm857_vm4, %vm858_vm3  ;;  %vm867_vm7 = vweird.f32 %v827_v40 }
 0x2ce   :  { %v850_v46 = vsel %vm849_vm2, %v1272_v35, %v846_v44  ;;  %v853_v4 = vmul.f32 %v1274_v43, %v852_v45 }
 0x2cf   :  { %v1001_v8 = vmul.f32 %v850_v46, %v1582_v47 }
 0x2d0   :  { %v854_v24 = vmul.f32 0.5, %v853_v4 }
 0x2d1   :  { %v1017_v31 = vmax.f32 %v1001_v8, 0.0 }
 0x2d2   :  { %v855_v22 = vsub.f32 1.5, %v854_v24 }
 0x2d3   :  { %v1276_v28 = vpop.eup %1275  ;;  %1033 = vst [vmem:[%s1746_s6] sm:$0xff] %v1017_v31 }
 0x2d4   :  { %v856_v51 = vmul.f32 %v1274_v43, %v855_v22  ;;  %v862_v56 = vmul.f32 %v1276_v28, %v827_v40  ;;  %vm868_vm6 = vweird.f32 %v1276_v28 }
 0x2d5   :  { %vm869_vm8 = vmor %vm867_vm7, %vm868_vm6 }
 0x2d6   :  { %v860_v59 = vsel %vm859_vm5, %v1274_v43, %v856_v51  ;;  %v863_v54 = vmul.f32 %v1276_v28, %v862_v56 }
 0x2d7   :  { %v1002_v55 = vmul.f32 %v860_v59, %v1586_v48 }
 0x2d8   :  { %v864_v58 = vmul.f32 0.5, %v863_v54 }
 0x2d9   :  { %v1018_v60 = vmax.f32 %v1002_v55, 0.0 }
 0x2da   :  { %v865_v47 = vsub.f32 1.5, %v864_v58  ;;  %v802_v61 = vpop.xlane.xlu2 %801 }
 0x2db   :  { %1034 = vst [vmem:[%s1746_s6 + $0x8] sm:$0xff] %v1018_v60  ;;  %v829_v0 = vadd.f32 1e-12, %v802_v61 }
 0x2dc   :  { %v866_v2 = vmul.f32 %v1276_v28, %v865_v47 }
 0x2dd   :  { %1277 = vrsqrt.f32 %v829_v0  ;;  %vm887_vm10 = vweird.f32 %v829_v0 }
 0x2de   :  { %v870_v3 = vsel %vm869_vm8, %v1276_v28, %v866_v2 }
 0x2df   :  { %v1003_v7 = vmul.f32 %v870_v3, %v1590_v49 }
 0x2e1   :  { %v1019_v9 = vmax.f32 %v1003_v7, 0.0 }
 0x2e2   :  { %v804_v13 = vpop.xlane.xlu0 %803 }
 0x2e3   :  { %v1278_v48 = vpop.eup %1277  ;;  %1035 = vst [vmem:[%s1746_s6 + $0x10] sm:$0xff] %v1019_v9  ;;  %v830_v62 = vadd.f32 1e-12, %v804_v13 }
 0x2e4   :  { %v882_v1 = vmul.f32 %v1278_v48, %v829_v0  ;;  %vm888_vm9 = vweird.f32 %v1278_v48 }
 0x2e5   :  { %1279 = vrsqrt.f32 %v830_v62  ;;  %vm889_vm11 = vmor %vm887_vm10, %vm888_vm9  ;;  %vm897_vm13 = vweird.f32 %v830_v62 }
 0x2e6   :  { %v883_v15 = vmul.f32 %v1278_v48, %v882_v1 }
 0x2e8   :  { %v884_v19 = vmul.f32 0.5, %v883_v15 }
 0x2ea   :  { %v885_v20 = vsub.f32 1.5, %v884_v19 }
 0x2eb   :  { %v1280_v21 = vpop.eup %1279 }
 0x2ec   :  { %v886_v26 = vmul.f32 %v1278_v48, %v885_v20  ;;  %v892_v29 = vmul.f32 %v1280_v21, %v830_v62  ;;  %vm898_vm12 = vweird.f32 %v1280_v21 }
 0x2ed   :  { %vm899_vm14 = vmor %vm897_vm13, %vm898_vm12 }
 0x2ee   :  { %v890_v49 = vsel %vm889_vm11, %v1278_v48, %v886_v26  ;;  %v893_v30 = vmul.f32 %v1280_v21, %v892_v29 }
 0x2ef   :  { %v1005_v50 = vmul.f32 %v890_v49, %v1594_v52 }
 0x2f0   :  { %v894_v53 = vmul.f32 0.5, %v893_v30 }
 0x2f1   :  { %v1021_v32 = vmax.f32 %v1005_v50, 0.0 }
 0x2f2   :  { %v895_v12 = vsub.f32 1.5, %v894_v53  ;;  %v808_v18 = vpop.xlane.xlu2 %807 }
 0x2f3   :  { %1037 = vst [vmem:[%s1746_s6 + $0x20] sm:$0xff] %v1021_v32  ;;  %v832_v33 = vadd.f32 1e-12, %v808_v18 }
 0x2f4   :  { %v896_v34 = vmul.f32 %v1280_v21, %v895_v12 }
 0x2f5   :  { %1281 = vrsqrt.f32 %v832_v33  ;;  %vm917_vm0 = vweird.f32 %v832_v33 }
 0x2f6   :  { %v900_v35 = vsel %vm899_vm14, %v1280_v21, %v896_v34 }
 0x2f7   :  { %v1006_v36 = vmul.f32 %v900_v35, %v1598_v57 }
 0x2f9   :  { %v1022_v37 = vmax.f32 %v1006_v36, 0.0 }
 0x2fa   :  { %v810_v39 = vpop.xlane.xlu0 %809 }
 0x2fb   :  { %v1282_v38 = vpop.eup %1281  ;;  %1038 = vst [vmem:[%s1746_s6 + $0x28] sm:$0xff] %v1022_v37  ;;  %v818_v52 = vpop.xlane.xlu1 %817  ;;  %v833_v43 = vadd.f32 1e-12, %v810_v39 }
 0x2fc   :  { %v912_v41 = vmul.f32 %v1282_v38, %v832_v33  ;;  %v837_v42 = vadd.f32 1e-12, %v818_v52  ;;  %vm918_vm15 = vweird.f32 %v1282_v38 }
 0x2fd   :  { %vm919_vm1 = vmor %vm917_vm0, %vm918_vm15  ;;  %vm927_vm6 = vweird.f32 %v833_v43 }
 0x2fe   :  { %v913_v40 = vmul.f32 %v1282_v38, %v912_v41  ;;  %1283 = vrsqrt.f32 %v837_v42  ;;  %vm967_vm4 = vweird.f32 %v837_v42 }
 0x2ff   :  { %1285 = vrsqrt.f32 %v833_v43 }
 0x300   :  { %v914_v44 = vmul.f32 0.5, %v913_v40 }
 0x302   :  { %v915_v45 = vsub.f32 1.5, %v914_v44 }
 0x303   :  { %v800_v46 = vpop.xlane.xlu1 %799 }
 0x304   :  { %v1284_v4 = vpop.eup %1283  ;;  %v916_v57 = vmul.f32 %v1282_v38, %v915_v45  ;;  %v828_v8 = vadd.f32 1e-12, %v800_v46 }
 0x305   :  { %v1286_v24 = vpop.eup %1285  ;;  %v962_v31 = vmul.f32 %v1284_v4, %v837_v42  ;;  %vm968_vm2 = vweird.f32 %v1284_v4 }
 0x306   :  { %v920_v22 = vsel %vm919_vm1, %v1282_v38, %v916_v57  ;;  %v922_v28 = vmul.f32 %v1286_v24, %v833_v43  ;;  %1287 = vrsqrt.f32 %v828_v8  ;;  %vm928_vm3 = vweird.f32 %v1286_v24  ;;  %vm969_vm5 = vmor %vm967_vm4, %vm968_vm2 }
 0x307   :  { %v1008_v51 = vmul.f32 %v920_v22, %v1602_v63  ;;  %v963_v56 = vmul.f32 %v1284_v4, %v962_v31  ;;  %vm929_vm7 = vmor %vm927_vm6, %vm928_vm3  ;;  %vm877_vm9 = vweird.f32 %v828_v8 }
 0x308   :  { %v923_v59 = vmul.f32 %v1286_v24, %v922_v28 }
 0x309   :  { %v1024_v54 = vmax.f32 %v1008_v51, 0.0  ;;  %v964_v55 = vmul.f32 0.5, %v963_v56 }
 0x30a   :  { %v924_v58 = vmul.f32 0.5, %v923_v59  ;;  %v814_v61 = vpop.xlane.xlu2 %813 }
 0x30b   :  { %1040 = vst [vmem:[%s1746_s6 + $0x38] sm:$0xff] %v1024_v54  ;;  %v965_v60 = vsub.f32 1.5, %v964_v55  ;;  %v806_v47 = vpop.xlane.xlu1 %805  ;;  %v1670_v7 = vadd.f32 1e-12, %v814_v61 }
 0x30c   :  { %v1288_v0 = vpop.eup %1287  ;;  %v925_v2 = vsub.f32 1.5, %v924_v58  ;;  %v831_v3 = vadd.f32 1e-12, %v806_v47 }
 0x30d   :  { %v966_v63 = vmul.f32 %v1284_v4, %v965_v60  ;;  %v872_v9 = vmul.f32 %v1288_v0, %v828_v8  ;;  %vm878_vm8 = vweird.f32 %v1288_v0  ;;  %vm947_vm15 = vweird.f32 %v1670_v7 }
 0x30e   :  { %v926_v13 = vmul.f32 %v1286_v24, %v925_v2  ;;  %1289 = vrsqrt.f32 %v831_v3  ;;  %vm879_vm10 = vmor %vm877_vm9, %vm878_vm8  ;;  %vm907_vm13 = vweird.f32 %v831_v3 }
 0x30f   :  { %v970_v48 = vsel %vm969_vm5, %v1284_v4, %v966_v63  ;;  %v873_v62 = vmul.f32 %v1288_v0, %v872_v9  ;;  %1291 = vrsqrt.f32 %v1670_v7 }
 0x310   :  { %v1013_v1 = vmul.f32 %v970_v48, %v1608_v6  ;;  %v930_v15 = vsel %vm929_vm7, %v1286_v24, %v926_v13 }
 0x311   :  { %v1009_v19 = vmul.f32 %v930_v15, %v1606_v5  ;;  %v874_v20 = vmul.f32 0.5, %v873_v62 }
 0x312   :  { %v1029_v21 = vmax.f32 %v1013_v1, 0.0  ;;  %v816_v30 = vpop.xlane.xlu0 %815  ;;  %v820_v32 = vpop.xlane.xlu2 %819 }
 0x313   :  { %v1025_v26 = vmax.f32 %v1009_v19, 0.0  ;;  %v875_v29 = vsub.f32 1.5, %v874_v20  ;;  %v812_v49 = vpop.xlane.xlu1 %811  ;;  %v1680_v12 = vadd.f32 1e-12, %v816_v30  ;;  %v1685_v33 = vadd.f32 1e-12, %v820_v32 }
 0x314   :  { %v1290_v50 = vpop.eup %1289  ;;  %1045 = vst [vmem:[%s1746_s6 + $0x60] sm:$0xff] %v1029_v21  ;;  %v1678_v53 = vadd.f32 1e-12, %v812_v49 }
 0x315   :  { %v1292_v6 = vpop.eup %1291  ;;  %1041 = vst [vmem:[%s1746_s6 + $0x40] sm:$0xff] %v1025_v26  ;;  %v876_v5 = vmul.f32 %v1288_v0, %v875_v29  ;;  %v902_v18 = vmul.f32 %v1290_v50, %v831_v3  ;;  %vm908_vm11 = vweird.f32 %v1290_v50  ;;  %vm977_vm6 = vweird.f32 %v1685_v33 }
 0x316   :  { %v942_v34 = vmul.f32 %v1292_v6, %v1670_v7  ;;  %1293 = vrsqrt.f32 %v1678_v53  ;;  %vm948_vm12 = vweird.f32 %v1292_v6  ;;  %vm909_vm14 = vmor %vm907_vm13, %vm908_vm11  ;;  %vm937_vm2 = vweird.f32 %v1678_v53 }
 0x317   :  { %v880_v35 = vsel %vm879_vm10, %v1288_v0, %v876_v5  ;;  %v903_v36 = vmul.f32 %v1290_v50, %v902_v18  ;;  %1295 = vrsqrt.f32 %v1685_v33  ;;  %vm949_vm0 = vmor %vm947_vm15, %vm948_vm12  ;;  %vm957_vm8 = vweird.f32 %v1680_v12 }
 0x318   :  { %v1004_v37 = vmul.f32 %v880_v35, %v1614_v11  ;;  %v943_v38 = vmul.f32 %v1292_v6, %v942_v34  ;;  %1297 = vrsqrt.f32 %v1680_v12 }
 0x319   :  { %v904_v52 = vmul.f32 0.5, %v903_v36 }
 0x31a   :  { %v1020_v39 = vmax.f32 %v1004_v37, 0.0  ;;  %v944_v41 = vmul.f32 0.5, %v943_v38  ;;  %v822_v40 = vpop.xlane.xlu0 %821 }
 0x31b   :  { %v905_v42 = vsub.f32 1.5, %v904_v52  ;;  %v824_v43 = vpop.xlane.xlu1 %823  ;;  %v1698_v8 = vadd.f32 1e-12, %v822_v40 }
 0x31c   :  { %v1294_v44 = vpop.eup %1293  ;;  %1036 = vst [vmem:[%s1746_s6 + $0x18] sm:$0xff] %v1020_v39  ;;  %v945_v45 = vsub.f32 1.5, %v944_v41  ;;  %v1695_v46 = vadd.f32 1e-12, %v824_v43 }
 0x31d   :  { %v1296_v11 = vpop.eup %1295  ;;  %v906_v4 = vmul.f32 %v1290_v50, %v905_v42  ;;  %v932_v57 = vmul.f32 %v1294_v44, %v1678_v53  ;;  %vm938_vm1 = vweird.f32 %v1294_v44 }
 0x31e   :  { %v1298_v24 = vpop.eup %1297  ;;  %v946_v31 = vmul.f32 %v1292_v6, %v945_v45  ;;  %v972_v22 = vmul.f32 %v1296_v11, %v1685_v33  ;;  %1299 = vrsqrt.f32 %v1695_v46  ;;  %vm978_vm3 = vweird.f32 %v1296_v11  ;;  %vm939_vm5 = vmor %vm937_vm2, %vm938_vm1 }
 0x31f   :  { %v910_v28 = vsel %vm909_vm14, %v1290_v50, %v906_v4  ;;  %v933_v51 = vmul.f32 %v1294_v44, %v932_v57  ;;  %v952_v56 = vmul.f32 %v1298_v24, %v1680_v12  ;;  %1301 = vrsqrt.f32 %v1698_v8  ;;  %vm979_vm7 = vmor %vm977_vm6, %vm978_vm3 }
 0x320   :  { %v1007_v59 = vmul.f32 %v910_v28, %v1618_v14  ;;  %v950_v54 = vsel %vm949_vm0, %v1292_v6, %v946_v31  ;;  %v973_v55 = vmul.f32 %v1296_v11, %v972_v22  ;;  %vm958_vm4 = vweird.f32 %v1298_v24 }
 0x321   :  { %v1011_v58 = vmul.f32 %v950_v54, %v1620_v17  ;;  %v934_v60 = vmul.f32 0.5, %v933_v51  ;;  %v953_v47 = vmul.f32 %v1298_v24, %v952_v56  ;;  %vm959_vm9 = vmor %vm957_vm8, %vm958_vm4  ;;  %vm997_vm11 = vweird.f32 %v1695_v46 }
 0x322   :  { %v1023_v61 = vmax.f32 %v1007_v59, 0.0  ;;  %v974_v0 = vmul.f32 0.5, %v973_v55  ;;  %vm987_vm14 = vweird.f32 %v1698_v8 }
 0x323   :  { %v1027_v2 = vmax.f32 %v1011_v58, 0.0  ;;  %v935_v3 = vsub.f32 1.5, %v934_v60  ;;  %v954_v7 = vmul.f32 0.5, %v953_v47 }
 0x324   :  { %v1300_v63 = vpop.eup %1299  ;;  %1039 = vst [vmem:[%s1746_s6 + $0x30] sm:$0xff] %v1023_v61  ;;  %v975_v14 = vsub.f32 1.5, %v974_v0 }
 0x325   :  { %1043 = vst [vmem:[%s1746_s6 + $0x50] sm:$0xff] %v1027_v2  ;;  %v936_v17 = vmul.f32 %v1294_v44, %v935_v3  ;;  %v955_v9 = vsub.f32 1.5, %v954_v7  ;;  %v992_v13 = vmul.f32 %v1300_v63, %v1695_v46  ;;  %v1302_v62 = vpop.eup %1301  ;;  %vm998_vm10 = vweird.f32 %v1300_v63 }
 0x326   :  { %v976_v48 = vmul.f32 %v1296_v11, %v975_v14  ;;  %v982_v26 = vmul.f32 %v1302_v62, %v1698_v8  ;;  %vm999_vm12 = vmor %vm997_vm11, %vm998_vm10  ;;  %vm988_vm13 = vweird.f32 %v1302_v62 }
 0x327   :  { %v940_v1 = vsel %vm939_vm5, %v1294_v44, %v936_v17  ;;  %v956_v15 = vmul.f32 %v1298_v24, %v955_v9  ;;  %v993_v19 = vmul.f32 %v1300_v63, %v992_v13  ;;  %vm989_vm15 = vmor %vm987_vm14, %vm988_vm13 }
 0x328   :  { %v1010_v20 = vmul.f32 %v940_v1, %v1626_v25  ;;  %v980_v21 = vsel %vm979_vm7, %v1296_v11, %v976_v48  ;;  %v983_v32 = vmul.f32 %v1302_v62, %v982_v26 }
 0x329   :  { %v1014_v29 = vmul.f32 %v980_v21, %v1628_v23  ;;  %v960_v49 = vsel %vm959_vm9, %v1298_v24, %v956_v15  ;;  %v994_v30 = vmul.f32 0.5, %v993_v19 }
 0x32a   :  { %v1026_v50 = vmax.f32 %v1010_v20, 0.0  ;;  %v1012_v53 = vmul.f32 %v960_v49, %v1630_v27  ;;  %v984_v12 = vmul.f32 0.5, %v983_v32 }
 0x32b   :  { %v1030_v6 = vmax.f32 %v1014_v29, 0.0  ;;  %v995_v5 = vsub.f32 1.5, %v994_v30 }
 0x32c   :  { %1042 = vst [vmem:[%s1746_s6 + $0x48] sm:$0xff] %v1026_v50  ;;  %v1028_v25 = vmax.f32 %v1012_v53, 0.0  ;;  %v985_v27 = vsub.f32 1.5, %v984_v12 }
 0x32d   :  { %1046 = vst [vmem:[%s1746_s6 + $0x68] sm:$0xff] %v1030_v6  ;;  %v996_v23 = vmul.f32 %v1300_v63, %v995_v5 }
 0x32e   :  { %1044 = vst [vmem:[%s1746_s6 + $0x58] sm:$0xff] %v1028_v25  ;;  %v986_v34 = vmul.f32 %v1302_v62, %v985_v27 }
 0x32f   :  { %v1000_v18 = vsel %vm999_vm12, %v1300_v63, %v996_v23 }
 0x330   :  { %v1016_v33 = vmul.f32 %v1000_v18, %v1640_v16  ;;  %v990_v36 = vsel %vm989_vm15, %v1302_v62, %v986_v34 }
 0x331   :  { %v1015_v37 = vmul.f32 %v990_v36, %v1638_v10 }
 0x332   :  { %v1032_v35 = vmax.f32 %v1016_v33, 0.0 }
 0x333   :  { %v1031_v38 = vmax.f32 %v1015_v37, 0.0 }
 0x334   :  { %1048 = vst [vmem:[%s1746_s6 + $0x78] sm:$0xff] %v1032_v35 }
 0x335   :  { %1047 = vst [vmem:[%s1746_s6 + $0x70] sm:$0xff] %v1031_v38 }

</bundles_post_ra>
